<compile_context>
chip_gen: v5e
topology: v5e:2x2
jax: 0.10.0
libtpu: 0.0.40
codegen_flags: <defaults>
</compile_context>

<pallas_src>
import functools

import jax
import jax.numpy as jnp
from jax.experimental import pallas as pl
from jax.experimental.pallas import tpu as pltpu


NC = 7  # number of semantic channels (see D3Model.onehot: nc = 7)


def _d3_kernel(nav_ref, w_ref, b_ref, sem_ref, noise_ref, cube_ref, *, num, nc):
    """Fused generator-recursion + Nav blend + channel argmax.

    nav_ref   : (B,)        SMEM  per-batch Nav scalars
    w_ref     : (nc*nc,)    SMEM  flattened 1x1-conv weight (w[k*nc+c] = W[k,c])
    b_ref     : (nc,)       SMEM  bias
    sem_ref   : (nc, TILE)  VMEM  input_semantics planes (lane-dense)
    noise_ref : (nc, TILE)  VMEM  noise planes
    cube_ref  : (1, TILE)   VMEM  int32 argmax labels (D3Model._tolong output)
    """
    bi = pl.program_id(0)
    nav = nav_ref[bi]
    # hoisted blend weights (computed once, reused across the recursion)
    w1 = 0.1 * nav
    w2 = 1.0 - w1

    sem_full = sem_ref[...].astype(jnp.float32)    # (nc, TILE)
    nz_full = noise_ref[...].astype(jnp.float32)   # (nc, TILE)

    # keep everything as a list of lane-dense (1, TILE) channel planes
    sem = [sem_full[c:c + 1, :] for c in range(nc)]
    nz = [nz_full[c:c + 1, :] for c in range(nc)]

    def net_g(s_planes):
        # pointwise (1x1) conv over channels, unrolled on the VPU:
        #   out[c] = tanh( sum_k W[k,c]*s[k] + b[c] + noise[c] )
        out = []
        for c in range(nc):
            acc = nz[c] + b_ref[c]
            for k in range(nc):
                acc = acc + w_ref[k * nc + c] * s_planes[k]
            out.append(jnp.tanh(acc))
        return out

    fake = net_g(sem)
    # generate_fake: for num > 1, blend semantics with previous fake and re-run
    for _ in range(num - 1):
        sem = [w1 * sem[c] + w2 * fake[c] for c in range(nc)]
        fake = net_g(sem)

    # _tolong: argmax over the channel axis, unrolled compare-and-select
    # (strict '>' keeps first-max tie-breaking like jnp/torch argmax)
    best_val = fake[0]
    best_idx = jnp.zeros_like(best_val, dtype=jnp.int32)
    for c in range(1, nc):
        gt = fake[c] > best_val
        best_val = jnp.where(gt, fake[c], best_val)
        best_idx = jnp.where(gt, jnp.int32(c), best_idx)
    cube_ref[...] = best_idx


def _pick_tile_hw(hw, target=8192):
    """Largest tile that divides HW, is a multiple of 128, and <= target."""
    if hw <= target or hw % 128 != 0:
        return hw
    t = target - (target % 128)
    for cand in range(t, 127, -128):
        if hw % cand == 0:
            return cand
    return hw


def d3_inference(noise, label, nav, w_g, b_g, *, num, tile_hw=None):
    """D3Model.forward(noise, data, mode='inference', num) -> fake_cube.

    noise, label : (B, C, H, W) float32   (NCHW, as in PyTorch)
    nav          : (B,) float32           (data['Nav'])
    w_g          : (C, C) float32         stand-in netG 1x1-conv weight
    b_g          : (C,)  float32          stand-in netG bias
    returns      : (B, 1, H, W) int32     (fake_cube; torch uses int64)
    """
    B, C, H, W = label.shape
    assert C == NC
    HW = H * W
    if tile_hw is None:
        tile_hw = _pick_tile_hw(HW)
    assert HW % tile_hw == 0
    assert tile_hw == HW or tile_hw % 128 == 0

    # NCHW -> (B, C, H*W): pure reshape, no transpose / extra HBM pass.
    sem = label.reshape(B, C, HW)
    nz = noise.reshape(B, C, HW)
    w_flat = w_g.reshape(-1)  # (C*C,) for SMEM scalar reads

    kernel = functools.partial(_d3_kernel, num=num, nc=C)

    rows = B * HW
    cost = pl.CostEstimate(
        flops=int(num * rows * (2 * C * C + 3 * C)),
        transcendentals=int(num * rows * C),
        bytes_accessed=int(2 * rows * C * 4 + rows * 4),
    )

    grid = (B, HW // tile_hw)

    cube = pl.pallas_call(
        kernel,
        out_shape=jax.ShapeDtypeStruct((B, 1, HW), jnp.int32),
        grid_spec=pltpu.PrefetchScalarGridSpec(
            num_scalar_prefetch=3,  # nav, w_flat, b_g land in SMEM
            grid=grid,
            in_specs=[
                # semantics planes: (C, TILE_HW), lane-dense
                pl.BlockSpec((None, C, tile_hw), lambda b, t, *_: (b, 0, t)),
                # noise planes
                pl.BlockSpec((None, C, tile_hw), lambda b, t, *_: (b, 0, t)),
            ],
            out_specs=pl.BlockSpec((None, 1, tile_hw), lambda b, t, *_: (b, 0, t)),
        ),
        compiler_params=pltpu.CompilerParams(
            dimension_semantics=("parallel", "parallel"),
        ),
        cost_estimate=cost,
    )(nav, w_flat, b_g, sem, nz)

    # (B, 1, H*W) -> (B, 1, H, W): free reshape
    return cube.reshape(B, 1, H, W)


def _reference(noise, label, nav, w_g, b_g, *, num):
    """Pure-JAX reference of the same forward (NCHW)."""
    def net_g(s):
        y = jnp.einsum("bchw,cd->bdhw", s, w_g) + b_g.reshape(1, -1, 1, 1) + noise
        return jnp.tanh(y)

    navr = nav.reshape(-1, 1, 1, 1)
    w1 = 0.1 * navr
    w2 = 1.0 - w1
    sem = label
    fake = net_g(sem)
    for _ in range(num - 1):
        sem = w1 * sem + w2 * fake
        fake = net_g(sem)
    return jnp.argmax(fake, axis=1)[:, None, :, :].astype(jnp.int32)


if __name__ == "__main__":
    B, C, H, W = 2, NC, 16, 16
    num = 3  # exercise the generator recursion / Nav blending

    key = jax.random.PRNGKey(0)
    k_noise, k_label, k_nav, k_w, k_b = jax.random.split(key, 5)

    noise = jax.random.normal(k_noise, (B, C, H, W), dtype=jnp.float32)
    # "label" semantics: one-hot over 7 classes per pixel (as produced upstream)
    cls = jax.random.randint(k_label, (B, H, W), 0, C)
    label = jax.nn.one_hot(cls, C, dtype=jnp.float32).transpose(0, 3, 1, 2)
    nav = jax.random.uniform(k_nav, (B,), dtype=jnp.float32)

    # deterministic stand-in netG parameters (1x1 conv over channels)
    w_g = jax.random.normal(k_w, (C, C), dtype=jnp.float32) * 0.5
    b_g = jax.random.normal(k_b, (C,), dtype=jnp.float32) * 0.1

    fake_cube = d3_inference(noise, label, nav, w_g, b_g, num=num)
    fake_cube = jax.block_until_ready(fake_cube)

    ref_cube = _reference(noise, label, nav, w_g, b_g, num=num)

    assert fake_cube.shape == (B, 1, H, W)
    mismatch = jnp.mean((fake_cube != ref_cube).astype(jnp.float32))
    assert float(mismatch) < 0.01, f"argmax mismatch fraction {float(mismatch)}"

    print("KERNEL_OK")
</pallas_src>

<mosaic_0001>
module attributes {stable_mosaic.version = 11 : i64} {
  func.func @_d3_kernel(%arg0: i32, %arg1: i32, %arg2: memref<2xf32, #tpu.memory_space<smem>>, %arg3: memref<49xf32, #tpu.memory_space<smem>>, %arg4: memref<7xf32, #tpu.memory_space<smem>>, %arg5: memref<1x7x256xf32, #tpu.memory_space<vmem>>, %arg6: memref<1x7x256xf32, #tpu.memory_space<vmem>>, %arg7: memref<1x1x256xi32, #tpu.memory_space<vmem>>) attributes {dimension_semantics = [#tpu.dimension_semantics<parallel>, #tpu.dimension_semantics<parallel>], iteration_bounds = array<i64: 2, 1>, scalar_prefetch = 3 : i64, scratch_operands = 0 : i64, tpu.core_type = #tpu.core_type<tc>, window_params = [{transform_indices = @transform_0, window_bounds = array<i64: 1, 7, 256>}, {transform_indices = @transform_1, window_bounds = array<i64: 1, 7, 256>}, {transform_indices = @transform_2, window_bounds = array<i64: 1, 1, 256>}]} {
    %0 = arith.index_cast %arg0 : i32 to index
    %1 = memref.load %arg2[%0] : memref<2xf32, #tpu.memory_space<smem>>
    %cst = arith.constant 1.000000e-01 : f32
    %2 = arith.mulf %cst, %1 : f32
    %cst_0 = arith.constant 1.000000e+00 : f32
    %3 = arith.subf %cst_0, %2 : f32
    %c0 = arith.constant 0 : index
    %c0_1 = arith.constant 0 : index
    %c0_2 = arith.constant 0 : index
    %4 = vector.load %arg5[%c0, %c0_1, %c0_2] : memref<1x7x256xf32, #tpu.memory_space<vmem>>, vector<1x7x256xf32>
    %5 = vector.shape_cast %4 : vector<1x7x256xf32> to vector<7x256xf32>
    %c0_3 = arith.constant 0 : index
    %c0_4 = arith.constant 0 : index
    %c0_5 = arith.constant 0 : index
    %6 = vector.load %arg6[%c0_3, %c0_4, %c0_5] : memref<1x7x256xf32, #tpu.memory_space<vmem>>, vector<1x7x256xf32>
    %7 = vector.shape_cast %6 : vector<1x7x256xf32> to vector<7x256xf32>
    %8 = vector.extract_strided_slice %5 {offsets = [0, 0], sizes = [1, 256], strides = [1, 1]} : vector<7x256xf32> to vector<1x256xf32>
    %9 = vector.extract_strided_slice %5 {offsets = [1, 0], sizes = [1, 256], strides = [1, 1]} : vector<7x256xf32> to vector<1x256xf32>
    %10 = vector.extract_strided_slice %5 {offsets = [2, 0], sizes = [1, 256], strides = [1, 1]} : vector<7x256xf32> to vector<1x256xf32>
    %11 = vector.extract_strided_slice %5 {offsets = [3, 0], sizes = [1, 256], strides = [1, 1]} : vector<7x256xf32> to vector<1x256xf32>
    %12 = vector.extract_strided_slice %5 {offsets = [4, 0], sizes = [1, 256], strides = [1, 1]} : vector<7x256xf32> to vector<1x256xf32>
    %13 = vector.extract_strided_slice %5 {offsets = [5, 0], sizes = [1, 256], strides = [1, 1]} : vector<7x256xf32> to vector<1x256xf32>
    %14 = vector.extract_strided_slice %5 {offsets = [6, 0], sizes = [1, 256], strides = [1, 1]} : vector<7x256xf32> to vector<1x256xf32>
    %15 = vector.extract_strided_slice %7 {offsets = [0, 0], sizes = [1, 256], strides = [1, 1]} : vector<7x256xf32> to vector<1x256xf32>
    %16 = vector.extract_strided_slice %7 {offsets = [1, 0], sizes = [1, 256], strides = [1, 1]} : vector<7x256xf32> to vector<1x256xf32>
    %17 = vector.extract_strided_slice %7 {offsets = [2, 0], sizes = [1, 256], strides = [1, 1]} : vector<7x256xf32> to vector<1x256xf32>
    %18 = vector.extract_strided_slice %7 {offsets = [3, 0], sizes = [1, 256], strides = [1, 1]} : vector<7x256xf32> to vector<1x256xf32>
    %19 = vector.extract_strided_slice %7 {offsets = [4, 0], sizes = [1, 256], strides = [1, 1]} : vector<7x256xf32> to vector<1x256xf32>
    %20 = vector.extract_strided_slice %7 {offsets = [5, 0], sizes = [1, 256], strides = [1, 1]} : vector<7x256xf32> to vector<1x256xf32>
    %21 = vector.extract_strided_slice %7 {offsets = [6, 0], sizes = [1, 256], strides = [1, 1]} : vector<7x256xf32> to vector<1x256xf32>
    %c0_6 = arith.constant 0 : index
    %22 = memref.load %arg4[%c0_6] : memref<7xf32, #tpu.memory_space<smem>>
    %23 = vector.broadcast %22 : f32 to vector<1x256xf32>
    %24 = arith.addf %15, %23 : vector<1x256xf32>
    %c0_7 = arith.constant 0 : index
    %25 = memref.load %arg3[%c0_7] : memref<49xf32, #tpu.memory_space<smem>>
    %26 = vector.broadcast %25 : f32 to vector<1x256xf32>
    %27 = arith.mulf %26, %8 : vector<1x256xf32>
    %28 = arith.addf %24, %27 : vector<1x256xf32>
    %c7 = arith.constant 7 : index
    %29 = memref.load %arg3[%c7] : memref<49xf32, #tpu.memory_space<smem>>
    %30 = vector.broadcast %29 : f32 to vector<1x256xf32>
    %31 = arith.mulf %30, %9 : vector<1x256xf32>
    %32 = arith.addf %28, %31 : vector<1x256xf32>
    %c14 = arith.constant 14 : index
    %33 = memref.load %arg3[%c14] : memref<49xf32, #tpu.memory_space<smem>>
    %34 = vector.broadcast %33 : f32 to vector<1x256xf32>
    %35 = arith.mulf %34, %10 : vector<1x256xf32>
    %36 = arith.addf %32, %35 : vector<1x256xf32>
    %c21 = arith.constant 21 : index
    %37 = memref.load %arg3[%c21] : memref<49xf32, #tpu.memory_space<smem>>
    %38 = vector.broadcast %37 : f32 to vector<1x256xf32>
    %39 = arith.mulf %38, %11 : vector<1x256xf32>
    %40 = arith.addf %36, %39 : vector<1x256xf32>
    %c28 = arith.constant 28 : index
    %41 = memref.load %arg3[%c28] : memref<49xf32, #tpu.memory_space<smem>>
    %42 = vector.broadcast %41 : f32 to vector<1x256xf32>
    %43 = arith.mulf %42, %12 : vector<1x256xf32>
    %44 = arith.addf %40, %43 : vector<1x256xf32>
    %c35 = arith.constant 35 : index
    %45 = memref.load %arg3[%c35] : memref<49xf32, #tpu.memory_space<smem>>
    %46 = vector.broadcast %45 : f32 to vector<1x256xf32>
    %47 = arith.mulf %46, %13 : vector<1x256xf32>
    %48 = arith.addf %44, %47 : vector<1x256xf32>
    %c42 = arith.constant 42 : index
    %49 = memref.load %arg3[%c42] : memref<49xf32, #tpu.memory_space<smem>>
    %50 = vector.broadcast %49 : f32 to vector<1x256xf32>
    %51 = arith.mulf %50, %14 : vector<1x256xf32>
    %52 = arith.addf %48, %51 : vector<1x256xf32>
    %53 = math.tanh %52 : vector<1x256xf32>
    %c1 = arith.constant 1 : index
    %54 = memref.load %arg4[%c1] : memref<7xf32, #tpu.memory_space<smem>>
    %55 = vector.broadcast %54 : f32 to vector<1x256xf32>
    %56 = arith.addf %16, %55 : vector<1x256xf32>
    %c1_8 = arith.constant 1 : index
    %57 = memref.load %arg3[%c1_8] : memref<49xf32, #tpu.memory_space<smem>>
    %58 = vector.broadcast %57 : f32 to vector<1x256xf32>
    %59 = arith.mulf %58, %8 : vector<1x256xf32>
    %60 = arith.addf %56, %59 : vector<1x256xf32>
    %c8 = arith.constant 8 : index
    %61 = memref.load %arg3[%c8] : memref<49xf32, #tpu.memory_space<smem>>
    %62 = vector.broadcast %61 : f32 to vector<1x256xf32>
    %63 = arith.mulf %62, %9 : vector<1x256xf32>
    %64 = arith.addf %60, %63 : vector<1x256xf32>
    %c15 = arith.constant 15 : index
    %65 = memref.load %arg3[%c15] : memref<49xf32, #tpu.memory_space<smem>>
    %66 = vector.broadcast %65 : f32 to vector<1x256xf32>
    %67 = arith.mulf %66, %10 : vector<1x256xf32>
    %68 = arith.addf %64, %67 : vector<1x256xf32>
    %c22 = arith.constant 22 : index
    %69 = memref.load %arg3[%c22] : memref<49xf32, #tpu.memory_space<smem>>
    %70 = vector.broadcast %69 : f32 to vector<1x256xf32>
    %71 = arith.mulf %70, %11 : vector<1x256xf32>
    %72 = arith.addf %68, %71 : vector<1x256xf32>
    %c29 = arith.constant 29 : index
    %73 = memref.load %arg3[%c29] : memref<49xf32, #tpu.memory_space<smem>>
    %74 = vector.broadcast %73 : f32 to vector<1x256xf32>
    %75 = arith.mulf %74, %12 : vector<1x256xf32>
    %76 = arith.addf %72, %75 : vector<1x256xf32>
    %c36 = arith.constant 36 : index
    %77 = memref.load %arg3[%c36] : memref<49xf32, #tpu.memory_space<smem>>
    %78 = vector.broadcast %77 : f32 to vector<1x256xf32>
    %79 = arith.mulf %78, %13 : vector<1x256xf32>
    %80 = arith.addf %76, %79 : vector<1x256xf32>
    %c43 = arith.constant 43 : index
    %81 = memref.load %arg3[%c43] : memref<49xf32, #tpu.memory_space<smem>>
    %82 = vector.broadcast %81 : f32 to vector<1x256xf32>
    %83 = arith.mulf %82, %14 : vector<1x256xf32>
    %84 = arith.addf %80, %83 : vector<1x256xf32>
    %85 = math.tanh %84 : vector<1x256xf32>
    %c2 = arith.constant 2 : index
    %86 = memref.load %arg4[%c2] : memref<7xf32, #tpu.memory_space<smem>>
    %87 = vector.broadcast %86 : f32 to vector<1x256xf32>
    %88 = arith.addf %17, %87 : vector<1x256xf32>
    %c2_9 = arith.constant 2 : index
    %89 = memref.load %arg3[%c2_9] : memref<49xf32, #tpu.memory_space<smem>>
    %90 = vector.broadcast %89 : f32 to vector<1x256xf32>
    %91 = arith.mulf %90, %8 : vector<1x256xf32>
    %92 = arith.addf %88, %91 : vector<1x256xf32>
    %c9 = arith.constant 9 : index
    %93 = memref.load %arg3[%c9] : memref<49xf32, #tpu.memory_space<smem>>
    %94 = vector.broadcast %93 : f32 to vector<1x256xf32>
    %95 = arith.mulf %94, %9 : vector<1x256xf32>
    %96 = arith.addf %92, %95 : vector<1x256xf32>
    %c16 = arith.constant 16 : index
    %97 = memref.load %arg3[%c16] : memref<49xf32, #tpu.memory_space<smem>>
    %98 = vector.broadcast %97 : f32 to vector<1x256xf32>
    %99 = arith.mulf %98, %10 : vector<1x256xf32>
    %100 = arith.addf %96, %99 : vector<1x256xf32>
    %c23 = arith.constant 23 : index
    %101 = memref.load %arg3[%c23] : memref<49xf32, #tpu.memory_space<smem>>
    %102 = vector.broadcast %101 : f32 to vector<1x256xf32>
    %103 = arith.mulf %102, %11 : vector<1x256xf32>
    %104 = arith.addf %100, %103 : vector<1x256xf32>
    %c30 = arith.constant 30 : index
    %105 = memref.load %arg3[%c30] : memref<49xf32, #tpu.memory_space<smem>>
    %106 = vector.broadcast %105 : f32 to vector<1x256xf32>
    %107 = arith.mulf %106, %12 : vector<1x256xf32>
    %108 = arith.addf %104, %107 : vector<1x256xf32>
    %c37 = arith.constant 37 : index
    %109 = memref.load %arg3[%c37] : memref<49xf32, #tpu.memory_space<smem>>
    %110 = vector.broadcast %109 : f32 to vector<1x256xf32>
    %111 = arith.mulf %110, %13 : vector<1x256xf32>
    %112 = arith.addf %108, %111 : vector<1x256xf32>
    %c44 = arith.constant 44 : index
    %113 = memref.load %arg3[%c44] : memref<49xf32, #tpu.memory_space<smem>>
    %114 = vector.broadcast %113 : f32 to vector<1x256xf32>
    %115 = arith.mulf %114, %14 : vector<1x256xf32>
    %116 = arith.addf %112, %115 : vector<1x256xf32>
    %117 = math.tanh %116 : vector<1x256xf32>
    %c3 = arith.constant 3 : index
    %118 = memref.load %arg4[%c3] : memref<7xf32, #tpu.memory_space<smem>>
    %119 = vector.broadcast %118 : f32 to vector<1x256xf32>
    %120 = arith.addf %18, %119 : vector<1x256xf32>
    %c3_10 = arith.constant 3 : index
    %121 = memref.load %arg3[%c3_10] : memref<49xf32, #tpu.memory_space<smem>>
    %122 = vector.broadcast %121 : f32 to vector<1x256xf32>
    %123 = arith.mulf %122, %8 : vector<1x256xf32>
    %124 = arith.addf %120, %123 : vector<1x256xf32>
    %c10 = arith.constant 10 : index
    %125 = memref.load %arg3[%c10] : memref<49xf32, #tpu.memory_space<smem>>
    %126 = vector.broadcast %125 : f32 to vector<1x256xf32>
    %127 = arith.mulf %126, %9 : vector<1x256xf32>
    %128 = arith.addf %124, %127 : vector<1x256xf32>
    %c17 = arith.constant 17 : index
    %129 = memref.load %arg3[%c17] : memref<49xf32, #tpu.memory_space<smem>>
    %130 = vector.broadcast %129 : f32 to vector<1x256xf32>
    %131 = arith.mulf %130, %10 : vector<1x256xf32>
    %132 = arith.addf %128, %131 : vector<1x256xf32>
    %c24 = arith.constant 24 : index
    %133 = memref.load %arg3[%c24] : memref<49xf32, #tpu.memory_space<smem>>
    %134 = vector.broadcast %133 : f32 to vector<1x256xf32>
    %135 = arith.mulf %134, %11 : vector<1x256xf32>
    %136 = arith.addf %132, %135 : vector<1x256xf32>
    %c31 = arith.constant 31 : index
    %137 = memref.load %arg3[%c31] : memref<49xf32, #tpu.memory_space<smem>>
    %138 = vector.broadcast %137 : f32 to vector<1x256xf32>
    %139 = arith.mulf %138, %12 : vector<1x256xf32>
    %140 = arith.addf %136, %139 : vector<1x256xf32>
    %c38 = arith.constant 38 : index
    %141 = memref.load %arg3[%c38] : memref<49xf32, #tpu.memory_space<smem>>
    %142 = vector.broadcast %141 : f32 to vector<1x256xf32>
    %143 = arith.mulf %142, %13 : vector<1x256xf32>
    %144 = arith.addf %140, %143 : vector<1x256xf32>
    %c45 = arith.constant 45 : index
    %145 = memref.load %arg3[%c45] : memref<49xf32, #tpu.memory_space<smem>>
    %146 = vector.broadcast %145 : f32 to vector<1x256xf32>
    %147 = arith.mulf %146, %14 : vector<1x256xf32>
    %148 = arith.addf %144, %147 : vector<1x256xf32>
    %149 = math.tanh %148 : vector<1x256xf32>
    %c4 = arith.constant 4 : index
    %150 = memref.load %arg4[%c4] : memref<7xf32, #tpu.memory_space<smem>>
    %151 = vector.broadcast %150 : f32 to vector<1x256xf32>
    %152 = arith.addf %19, %151 : vector<1x256xf32>
    %c4_11 = arith.constant 4 : index
    %153 = memref.load %arg3[%c4_11] : memref<49xf32, #tpu.memory_space<smem>>
    %154 = vector.broadcast %153 : f32 to vector<1x256xf32>
    %155 = arith.mulf %154, %8 : vector<1x256xf32>
    %156 = arith.addf %152, %155 : vector<1x256xf32>
    %c11 = arith.constant 11 : index
    %157 = memref.load %arg3[%c11] : memref<49xf32, #tpu.memory_space<smem>>
    %158 = vector.broadcast %157 : f32 to vector<1x256xf32>
    %159 = arith.mulf %158, %9 : vector<1x256xf32>
    %160 = arith.addf %156, %159 : vector<1x256xf32>
    %c18 = arith.constant 18 : index
    %161 = memref.load %arg3[%c18] : memref<49xf32, #tpu.memory_space<smem>>
    %162 = vector.broadcast %161 : f32 to vector<1x256xf32>
    %163 = arith.mulf %162, %10 : vector<1x256xf32>
    %164 = arith.addf %160, %163 : vector<1x256xf32>
    %c25 = arith.constant 25 : index
    %165 = memref.load %arg3[%c25] : memref<49xf32, #tpu.memory_space<smem>>
    %166 = vector.broadcast %165 : f32 to vector<1x256xf32>
    %167 = arith.mulf %166, %11 : vector<1x256xf32>
    %168 = arith.addf %164, %167 : vector<1x256xf32>
    %c32 = arith.constant 32 : index
    %169 = memref.load %arg3[%c32] : memref<49xf32, #tpu.memory_space<smem>>
    %170 = vector.broadcast %169 : f32 to vector<1x256xf32>
    %171 = arith.mulf %170, %12 : vector<1x256xf32>
    %172 = arith.addf %168, %171 : vector<1x256xf32>
    %c39 = arith.constant 39 : index
    %173 = memref.load %arg3[%c39] : memref<49xf32, #tpu.memory_space<smem>>
    %174 = vector.broadcast %173 : f32 to vector<1x256xf32>
    %175 = arith.mulf %174, %13 : vector<1x256xf32>
    %176 = arith.addf %172, %175 : vector<1x256xf32>
    %c46 = arith.constant 46 : index
    %177 = memref.load %arg3[%c46] : memref<49xf32, #tpu.memory_space<smem>>
    %178 = vector.broadcast %177 : f32 to vector<1x256xf32>
    %179 = arith.mulf %178, %14 : vector<1x256xf32>
    %180 = arith.addf %176, %179 : vector<1x256xf32>
    %181 = math.tanh %180 : vector<1x256xf32>
    %c5 = arith.constant 5 : index
    %182 = memref.load %arg4[%c5] : memref<7xf32, #tpu.memory_space<smem>>
    %183 = vector.broadcast %182 : f32 to vector<1x256xf32>
    %184 = arith.addf %20, %183 : vector<1x256xf32>
    %c5_12 = arith.constant 5 : index
    %185 = memref.load %arg3[%c5_12] : memref<49xf32, #tpu.memory_space<smem>>
    %186 = vector.broadcast %185 : f32 to vector<1x256xf32>
    %187 = arith.mulf %186, %8 : vector<1x256xf32>
    %188 = arith.addf %184, %187 : vector<1x256xf32>
    %c12 = arith.constant 12 : index
    %189 = memref.load %arg3[%c12] : memref<49xf32, #tpu.memory_space<smem>>
    %190 = vector.broadcast %189 : f32 to vector<1x256xf32>
    %191 = arith.mulf %190, %9 : vector<1x256xf32>
    %192 = arith.addf %188, %191 : vector<1x256xf32>
    %c19 = arith.constant 19 : index
    %193 = memref.load %arg3[%c19] : memref<49xf32, #tpu.memory_space<smem>>
    %194 = vector.broadcast %193 : f32 to vector<1x256xf32>
    %195 = arith.mulf %194, %10 : vector<1x256xf32>
    %196 = arith.addf %192, %195 : vector<1x256xf32>
    %c26 = arith.constant 26 : index
    %197 = memref.load %arg3[%c26] : memref<49xf32, #tpu.memory_space<smem>>
    %198 = vector.broadcast %197 : f32 to vector<1x256xf32>
    %199 = arith.mulf %198, %11 : vector<1x256xf32>
    %200 = arith.addf %196, %199 : vector<1x256xf32>
    %c33 = arith.constant 33 : index
    %201 = memref.load %arg3[%c33] : memref<49xf32, #tpu.memory_space<smem>>
    %202 = vector.broadcast %201 : f32 to vector<1x256xf32>
    %203 = arith.mulf %202, %12 : vector<1x256xf32>
    %204 = arith.addf %200, %203 : vector<1x256xf32>
    %c40 = arith.constant 40 : index
    %205 = memref.load %arg3[%c40] : memref<49xf32, #tpu.memory_space<smem>>
    %206 = vector.broadcast %205 : f32 to vector<1x256xf32>
    %207 = arith.mulf %206, %13 : vector<1x256xf32>
    %208 = arith.addf %204, %207 : vector<1x256xf32>
    %c47 = arith.constant 47 : index
    %209 = memref.load %arg3[%c47] : memref<49xf32, #tpu.memory_space<smem>>
    %210 = vector.broadcast %209 : f32 to vector<1x256xf32>
    %211 = arith.mulf %210, %14 : vector<1x256xf32>
    %212 = arith.addf %208, %211 : vector<1x256xf32>
    %213 = math.tanh %212 : vector<1x256xf32>
    %c6 = arith.constant 6 : index
    %214 = memref.load %arg4[%c6] : memref<7xf32, #tpu.memory_space<smem>>
    %215 = vector.broadcast %214 : f32 to vector<1x256xf32>
    %216 = arith.addf %21, %215 : vector<1x256xf32>
    %c6_13 = arith.constant 6 : index
    %217 = memref.load %arg3[%c6_13] : memref<49xf32, #tpu.memory_space<smem>>
    %218 = vector.broadcast %217 : f32 to vector<1x256xf32>
    %219 = arith.mulf %218, %8 : vector<1x256xf32>
    %220 = arith.addf %216, %219 : vector<1x256xf32>
    %c13 = arith.constant 13 : index
    %221 = memref.load %arg3[%c13] : memref<49xf32, #tpu.memory_space<smem>>
    %222 = vector.broadcast %221 : f32 to vector<1x256xf32>
    %223 = arith.mulf %222, %9 : vector<1x256xf32>
    %224 = arith.addf %220, %223 : vector<1x256xf32>
    %c20 = arith.constant 20 : index
    %225 = memref.load %arg3[%c20] : memref<49xf32, #tpu.memory_space<smem>>
    %226 = vector.broadcast %225 : f32 to vector<1x256xf32>
    %227 = arith.mulf %226, %10 : vector<1x256xf32>
    %228 = arith.addf %224, %227 : vector<1x256xf32>
    %c27 = arith.constant 27 : index
    %229 = memref.load %arg3[%c27] : memref<49xf32, #tpu.memory_space<smem>>
    %230 = vector.broadcast %229 : f32 to vector<1x256xf32>
    %231 = arith.mulf %230, %11 : vector<1x256xf32>
    %232 = arith.addf %228, %231 : vector<1x256xf32>
    %c34 = arith.constant 34 : index
    %233 = memref.load %arg3[%c34] : memref<49xf32, #tpu.memory_space<smem>>
    %234 = vector.broadcast %233 : f32 to vector<1x256xf32>
    %235 = arith.mulf %234, %12 : vector<1x256xf32>
    %236 = arith.addf %232, %235 : vector<1x256xf32>
    %c41 = arith.constant 41 : index
    %237 = memref.load %arg3[%c41] : memref<49xf32, #tpu.memory_space<smem>>
    %238 = vector.broadcast %237 : f32 to vector<1x256xf32>
    %239 = arith.mulf %238, %13 : vector<1x256xf32>
    %240 = arith.addf %236, %239 : vector<1x256xf32>
    %c48 = arith.constant 48 : index
    %241 = memref.load %arg3[%c48] : memref<49xf32, #tpu.memory_space<smem>>
    %242 = vector.broadcast %241 : f32 to vector<1x256xf32>
    %243 = arith.mulf %242, %14 : vector<1x256xf32>
    %244 = arith.addf %240, %243 : vector<1x256xf32>
    %245 = math.tanh %244 : vector<1x256xf32>
    %246 = vector.broadcast %2 : f32 to vector<1x256xf32>
    %247 = arith.mulf %246, %8 : vector<1x256xf32>
    %248 = vector.broadcast %3 : f32 to vector<1x256xf32>
    %249 = arith.mulf %248, %53 : vector<1x256xf32>
    %250 = arith.addf %247, %249 : vector<1x256xf32>
    %251 = vector.broadcast %2 : f32 to vector<1x256xf32>
    %252 = arith.mulf %251, %9 : vector<1x256xf32>
    %253 = vector.broadcast %3 : f32 to vector<1x256xf32>
    %254 = arith.mulf %253, %85 : vector<1x256xf32>
    %255 = arith.addf %252, %254 : vector<1x256xf32>
    %256 = vector.broadcast %2 : f32 to vector<1x256xf32>
    %257 = arith.mulf %256, %10 : vector<1x256xf32>
    %258 = vector.broadcast %3 : f32 to vector<1x256xf32>
    %259 = arith.mulf %258, %117 : vector<1x256xf32>
    %260 = arith.addf %257, %259 : vector<1x256xf32>
    %261 = vector.broadcast %2 : f32 to vector<1x256xf32>
    %262 = arith.mulf %261, %11 : vector<1x256xf32>
    %263 = vector.broadcast %3 : f32 to vector<1x256xf32>
    %264 = arith.mulf %263, %149 : vector<1x256xf32>
    %265 = arith.addf %262, %264 : vector<1x256xf32>
    %266 = vector.broadcast %2 : f32 to vector<1x256xf32>
    %267 = arith.mulf %266, %12 : vector<1x256xf32>
    %268 = vector.broadcast %3 : f32 to vector<1x256xf32>
    %269 = arith.mulf %268, %181 : vector<1x256xf32>
    %270 = arith.addf %267, %269 : vector<1x256xf32>
    %271 = vector.broadcast %2 : f32 to vector<1x256xf32>
    %272 = arith.mulf %271, %13 : vector<1x256xf32>
    %273 = vector.broadcast %3 : f32 to vector<1x256xf32>
    %274 = arith.mulf %273, %213 : vector<1x256xf32>
    %275 = arith.addf %272, %274 : vector<1x256xf32>
    %276 = vector.broadcast %2 : f32 to vector<1x256xf32>
    %277 = arith.mulf %276, %14 : vector<1x256xf32>
    %278 = vector.broadcast %3 : f32 to vector<1x256xf32>
    %279 = arith.mulf %278, %245 : vector<1x256xf32>
    %280 = arith.addf %277, %279 : vector<1x256xf32>
    %c0_14 = arith.constant 0 : index
    %281 = memref.load %arg4[%c0_14] : memref<7xf32, #tpu.memory_space<smem>>
    %282 = vector.broadcast %281 : f32 to vector<1x256xf32>
    %283 = arith.addf %15, %282 : vector<1x256xf32>
    %c0_15 = arith.constant 0 : index
    %284 = memref.load %arg3[%c0_15] : memref<49xf32, #tpu.memory_space<smem>>
    %285 = vector.broadcast %284 : f32 to vector<1x256xf32>
    %286 = arith.mulf %285, %250 : vector<1x256xf32>
    %287 = arith.addf %283, %286 : vector<1x256xf32>
    %c7_16 = arith.constant 7 : index
    %288 = memref.load %arg3[%c7_16] : memref<49xf32, #tpu.memory_space<smem>>
    %289 = vector.broadcast %288 : f32 to vector<1x256xf32>
    %290 = arith.mulf %289, %255 : vector<1x256xf32>
    %291 = arith.addf %287, %290 : vector<1x256xf32>
    %c14_17 = arith.constant 14 : index
    %292 = memref.load %arg3[%c14_17] : memref<49xf32, #tpu.memory_space<smem>>
    %293 = vector.broadcast %292 : f32 to vector<1x256xf32>
    %294 = arith.mulf %293, %260 : vector<1x256xf32>
    %295 = arith.addf %291, %294 : vector<1x256xf32>
    %c21_18 = arith.constant 21 : index
    %296 = memref.load %arg3[%c21_18] : memref<49xf32, #tpu.memory_space<smem>>
    %297 = vector.broadcast %296 : f32 to vector<1x256xf32>
    %298 = arith.mulf %297, %265 : vector<1x256xf32>
    %299 = arith.addf %295, %298 : vector<1x256xf32>
    %c28_19 = arith.constant 28 : index
    %300 = memref.load %arg3[%c28_19] : memref<49xf32, #tpu.memory_space<smem>>
    %301 = vector.broadcast %300 : f32 to vector<1x256xf32>
    %302 = arith.mulf %301, %270 : vector<1x256xf32>
    %303 = arith.addf %299, %302 : vector<1x256xf32>
    %c35_20 = arith.constant 35 : index
    %304 = memref.load %arg3[%c35_20] : memref<49xf32, #tpu.memory_space<smem>>
    %305 = vector.broadcast %304 : f32 to vector<1x256xf32>
    %306 = arith.mulf %305, %275 : vector<1x256xf32>
    %307 = arith.addf %303, %306 : vector<1x256xf32>
    %c42_21 = arith.constant 42 : index
    %308 = memref.load %arg3[%c42_21] : memref<49xf32, #tpu.memory_space<smem>>
    %309 = vector.broadcast %308 : f32 to vector<1x256xf32>
    %310 = arith.mulf %309, %280 : vector<1x256xf32>
    %311 = arith.addf %307, %310 : vector<1x256xf32>
    %312 = math.tanh %311 : vector<1x256xf32>
    %c1_22 = arith.constant 1 : index
    %313 = memref.load %arg4[%c1_22] : memref<7xf32, #tpu.memory_space<smem>>
    %314 = vector.broadcast %313 : f32 to vector<1x256xf32>
    %315 = arith.addf %16, %314 : vector<1x256xf32>
    %c1_23 = arith.constant 1 : index
    %316 = memref.load %arg3[%c1_23] : memref<49xf32, #tpu.memory_space<smem>>
    %317 = vector.broadcast %316 : f32 to vector<1x256xf32>
    %318 = arith.mulf %317, %250 : vector<1x256xf32>
    %319 = arith.addf %315, %318 : vector<1x256xf32>
    %c8_24 = arith.constant 8 : index
    %320 = memref.load %arg3[%c8_24] : memref<49xf32, #tpu.memory_space<smem>>
    %321 = vector.broadcast %320 : f32 to vector<1x256xf32>
    %322 = arith.mulf %321, %255 : vector<1x256xf32>
    %323 = arith.addf %319, %322 : vector<1x256xf32>
    %c15_25 = arith.constant 15 : index
    %324 = memref.load %arg3[%c15_25] : memref<49xf32, #tpu.memory_space<smem>>
    %325 = vector.broadcast %324 : f32 to vector<1x256xf32>
    %326 = arith.mulf %325, %260 : vector<1x256xf32>
    %327 = arith.addf %323, %326 : vector<1x256xf32>
    %c22_26 = arith.constant 22 : index
    %328 = memref.load %arg3[%c22_26] : memref<49xf32, #tpu.memory_space<smem>>
    %329 = vector.broadcast %328 : f32 to vector<1x256xf32>
    %330 = arith.mulf %329, %265 : vector<1x256xf32>
    %331 = arith.addf %327, %330 : vector<1x256xf32>
    %c29_27 = arith.constant 29 : index
    %332 = memref.load %arg3[%c29_27] : memref<49xf32, #tpu.memory_space<smem>>
    %333 = vector.broadcast %332 : f32 to vector<1x256xf32>
    %334 = arith.mulf %333, %270 : vector<1x256xf32>
    %335 = arith.addf %331, %334 : vector<1x256xf32>
    %c36_28 = arith.constant 36 : index
    %336 = memref.load %arg3[%c36_28] : memref<49xf32, #tpu.memory_space<smem>>
    %337 = vector.broadcast %336 : f32 to vector<1x256xf32>
    %338 = arith.mulf %337, %275 : vector<1x256xf32>
    %339 = arith.addf %335, %338 : vector<1x256xf32>
    %c43_29 = arith.constant 43 : index
    %340 = memref.load %arg3[%c43_29] : memref<49xf32, #tpu.memory_space<smem>>
    %341 = vector.broadcast %340 : f32 to vector<1x256xf32>
    %342 = arith.mulf %341, %280 : vector<1x256xf32>
    %343 = arith.addf %339, %342 : vector<1x256xf32>
    %344 = math.tanh %343 : vector<1x256xf32>
    %c2_30 = arith.constant 2 : index
    %345 = memref.load %arg4[%c2_30] : memref<7xf32, #tpu.memory_space<smem>>
    %346 = vector.broadcast %345 : f32 to vector<1x256xf32>
    %347 = arith.addf %17, %346 : vector<1x256xf32>
    %c2_31 = arith.constant 2 : index
    %348 = memref.load %arg3[%c2_31] : memref<49xf32, #tpu.memory_space<smem>>
    %349 = vector.broadcast %348 : f32 to vector<1x256xf32>
    %350 = arith.mulf %349, %250 : vector<1x256xf32>
    %351 = arith.addf %347, %350 : vector<1x256xf32>
    %c9_32 = arith.constant 9 : index
    %352 = memref.load %arg3[%c9_32] : memref<49xf32, #tpu.memory_space<smem>>
    %353 = vector.broadcast %352 : f32 to vector<1x256xf32>
    %354 = arith.mulf %353, %255 : vector<1x256xf32>
    %355 = arith.addf %351, %354 : vector<1x256xf32>
    %c16_33 = arith.constant 16 : index
    %356 = memref.load %arg3[%c16_33] : memref<49xf32, #tpu.memory_space<smem>>
    %357 = vector.broadcast %356 : f32 to vector<1x256xf32>
    %358 = arith.mulf %357, %260 : vector<1x256xf32>
    %359 = arith.addf %355, %358 : vector<1x256xf32>
    %c23_34 = arith.constant 23 : index
    %360 = memref.load %arg3[%c23_34] : memref<49xf32, #tpu.memory_space<smem>>
    %361 = vector.broadcast %360 : f32 to vector<1x256xf32>
    %362 = arith.mulf %361, %265 : vector<1x256xf32>
    %363 = arith.addf %359, %362 : vector<1x256xf32>
    %c30_35 = arith.constant 30 : index
    %364 = memref.load %arg3[%c30_35] : memref<49xf32, #tpu.memory_space<smem>>
    %365 = vector.broadcast %364 : f32 to vector<1x256xf32>
    %366 = arith.mulf %365, %270 : vector<1x256xf32>
    %367 = arith.addf %363, %366 : vector<1x256xf32>
    %c37_36 = arith.constant 37 : index
    %368 = memref.load %arg3[%c37_36] : memref<49xf32, #tpu.memory_space<smem>>
    %369 = vector.broadcast %368 : f32 to vector<1x256xf32>
    %370 = arith.mulf %369, %275 : vector<1x256xf32>
    %371 = arith.addf %367, %370 : vector<1x256xf32>
    %c44_37 = arith.constant 44 : index
    %372 = memref.load %arg3[%c44_37] : memref<49xf32, #tpu.memory_space<smem>>
    %373 = vector.broadcast %372 : f32 to vector<1x256xf32>
    %374 = arith.mulf %373, %280 : vector<1x256xf32>
    %375 = arith.addf %371, %374 : vector<1x256xf32>
    %376 = math.tanh %375 : vector<1x256xf32>
    %c3_38 = arith.constant 3 : index
    %377 = memref.load %arg4[%c3_38] : memref<7xf32, #tpu.memory_space<smem>>
    %378 = vector.broadcast %377 : f32 to vector<1x256xf32>
    %379 = arith.addf %18, %378 : vector<1x256xf32>
    %c3_39 = arith.constant 3 : index
    %380 = memref.load %arg3[%c3_39] : memref<49xf32, #tpu.memory_space<smem>>
    %381 = vector.broadcast %380 : f32 to vector<1x256xf32>
    %382 = arith.mulf %381, %250 : vector<1x256xf32>
    %383 = arith.addf %379, %382 : vector<1x256xf32>
    %c10_40 = arith.constant 10 : index
    %384 = memref.load %arg3[%c10_40] : memref<49xf32, #tpu.memory_space<smem>>
    %385 = vector.broadcast %384 : f32 to vector<1x256xf32>
    %386 = arith.mulf %385, %255 : vector<1x256xf32>
    %387 = arith.addf %383, %386 : vector<1x256xf32>
    %c17_41 = arith.constant 17 : index
    %388 = memref.load %arg3[%c17_41] : memref<49xf32, #tpu.memory_space<smem>>
    %389 = vector.broadcast %388 : f32 to vector<1x256xf32>
    %390 = arith.mulf %389, %260 : vector<1x256xf32>
    %391 = arith.addf %387, %390 : vector<1x256xf32>
    %c24_42 = arith.constant 24 : index
    %392 = memref.load %arg3[%c24_42] : memref<49xf32, #tpu.memory_space<smem>>
    %393 = vector.broadcast %392 : f32 to vector<1x256xf32>
    %394 = arith.mulf %393, %265 : vector<1x256xf32>
    %395 = arith.addf %391, %394 : vector<1x256xf32>
    %c31_43 = arith.constant 31 : index
    %396 = memref.load %arg3[%c31_43] : memref<49xf32, #tpu.memory_space<smem>>
    %397 = vector.broadcast %396 : f32 to vector<1x256xf32>
    %398 = arith.mulf %397, %270 : vector<1x256xf32>
    %399 = arith.addf %395, %398 : vector<1x256xf32>
    %c38_44 = arith.constant 38 : index
    %400 = memref.load %arg3[%c38_44] : memref<49xf32, #tpu.memory_space<smem>>
    %401 = vector.broadcast %400 : f32 to vector<1x256xf32>
    %402 = arith.mulf %401, %275 : vector<1x256xf32>
    %403 = arith.addf %399, %402 : vector<1x256xf32>
    %c45_45 = arith.constant 45 : index
    %404 = memref.load %arg3[%c45_45] : memref<49xf32, #tpu.memory_space<smem>>
    %405 = vector.broadcast %404 : f32 to vector<1x256xf32>
    %406 = arith.mulf %405, %280 : vector<1x256xf32>
    %407 = arith.addf %403, %406 : vector<1x256xf32>
    %408 = math.tanh %407 : vector<1x256xf32>
    %c4_46 = arith.constant 4 : index
    %409 = memref.load %arg4[%c4_46] : memref<7xf32, #tpu.memory_space<smem>>
    %410 = vector.broadcast %409 : f32 to vector<1x256xf32>
    %411 = arith.addf %19, %410 : vector<1x256xf32>
    %c4_47 = arith.constant 4 : index
    %412 = memref.load %arg3[%c4_47] : memref<49xf32, #tpu.memory_space<smem>>
    %413 = vector.broadcast %412 : f32 to vector<1x256xf32>
    %414 = arith.mulf %413, %250 : vector<1x256xf32>
    %415 = arith.addf %411, %414 : vector<1x256xf32>
    %c11_48 = arith.constant 11 : index
    %416 = memref.load %arg3[%c11_48] : memref<49xf32, #tpu.memory_space<smem>>
    %417 = vector.broadcast %416 : f32 to vector<1x256xf32>
    %418 = arith.mulf %417, %255 : vector<1x256xf32>
    %419 = arith.addf %415, %418 : vector<1x256xf32>
    %c18_49 = arith.constant 18 : index
    %420 = memref.load %arg3[%c18_49] : memref<49xf32, #tpu.memory_space<smem>>
    %421 = vector.broadcast %420 : f32 to vector<1x256xf32>
    %422 = arith.mulf %421, %260 : vector<1x256xf32>
    %423 = arith.addf %419, %422 : vector<1x256xf32>
    %c25_50 = arith.constant 25 : index
    %424 = memref.load %arg3[%c25_50] : memref<49xf32, #tpu.memory_space<smem>>
    %425 = vector.broadcast %424 : f32 to vector<1x256xf32>
    %426 = arith.mulf %425, %265 : vector<1x256xf32>
    %427 = arith.addf %423, %426 : vector<1x256xf32>
    %c32_51 = arith.constant 32 : index
    %428 = memref.load %arg3[%c32_51] : memref<49xf32, #tpu.memory_space<smem>>
    %429 = vector.broadcast %428 : f32 to vector<1x256xf32>
    %430 = arith.mulf %429, %270 : vector<1x256xf32>
    %431 = arith.addf %427, %430 : vector<1x256xf32>
    %c39_52 = arith.constant 39 : index
    %432 = memref.load %arg3[%c39_52] : memref<49xf32, #tpu.memory_space<smem>>
    %433 = vector.broadcast %432 : f32 to vector<1x256xf32>
    %434 = arith.mulf %433, %275 : vector<1x256xf32>
    %435 = arith.addf %431, %434 : vector<1x256xf32>
    %c46_53 = arith.constant 46 : index
    %436 = memref.load %arg3[%c46_53] : memref<49xf32, #tpu.memory_space<smem>>
    %437 = vector.broadcast %436 : f32 to vector<1x256xf32>
    %438 = arith.mulf %437, %280 : vector<1x256xf32>
    %439 = arith.addf %435, %438 : vector<1x256xf32>
    %440 = math.tanh %439 : vector<1x256xf32>
    %c5_54 = arith.constant 5 : index
    %441 = memref.load %arg4[%c5_54] : memref<7xf32, #tpu.memory_space<smem>>
    %442 = vector.broadcast %441 : f32 to vector<1x256xf32>
    %443 = arith.addf %20, %442 : vector<1x256xf32>
    %c5_55 = arith.constant 5 : index
    %444 = memref.load %arg3[%c5_55] : memref<49xf32, #tpu.memory_space<smem>>
    %445 = vector.broadcast %444 : f32 to vector<1x256xf32>
    %446 = arith.mulf %445, %250 : vector<1x256xf32>
    %447 = arith.addf %443, %446 : vector<1x256xf32>
    %c12_56 = arith.constant 12 : index
    %448 = memref.load %arg3[%c12_56] : memref<49xf32, #tpu.memory_space<smem>>
    %449 = vector.broadcast %448 : f32 to vector<1x256xf32>
    %450 = arith.mulf %449, %255 : vector<1x256xf32>
    %451 = arith.addf %447, %450 : vector<1x256xf32>
    %c19_57 = arith.constant 19 : index
    %452 = memref.load %arg3[%c19_57] : memref<49xf32, #tpu.memory_space<smem>>
    %453 = vector.broadcast %452 : f32 to vector<1x256xf32>
    %454 = arith.mulf %453, %260 : vector<1x256xf32>
    %455 = arith.addf %451, %454 : vector<1x256xf32>
    %c26_58 = arith.constant 26 : index
    %456 = memref.load %arg3[%c26_58] : memref<49xf32, #tpu.memory_space<smem>>
    %457 = vector.broadcast %456 : f32 to vector<1x256xf32>
    %458 = arith.mulf %457, %265 : vector<1x256xf32>
    %459 = arith.addf %455, %458 : vector<1x256xf32>
    %c33_59 = arith.constant 33 : index
    %460 = memref.load %arg3[%c33_59] : memref<49xf32, #tpu.memory_space<smem>>
    %461 = vector.broadcast %460 : f32 to vector<1x256xf32>
    %462 = arith.mulf %461, %270 : vector<1x256xf32>
    %463 = arith.addf %459, %462 : vector<1x256xf32>
    %c40_60 = arith.constant 40 : index
    %464 = memref.load %arg3[%c40_60] : memref<49xf32, #tpu.memory_space<smem>>
    %465 = vector.broadcast %464 : f32 to vector<1x256xf32>
    %466 = arith.mulf %465, %275 : vector<1x256xf32>
    %467 = arith.addf %463, %466 : vector<1x256xf32>
    %c47_61 = arith.constant 47 : index
    %468 = memref.load %arg3[%c47_61] : memref<49xf32, #tpu.memory_space<smem>>
    %469 = vector.broadcast %468 : f32 to vector<1x256xf32>
    %470 = arith.mulf %469, %280 : vector<1x256xf32>
    %471 = arith.addf %467, %470 : vector<1x256xf32>
    %472 = math.tanh %471 : vector<1x256xf32>
    %c6_62 = arith.constant 6 : index
    %473 = memref.load %arg4[%c6_62] : memref<7xf32, #tpu.memory_space<smem>>
    %474 = vector.broadcast %473 : f32 to vector<1x256xf32>
    %475 = arith.addf %21, %474 : vector<1x256xf32>
    %c6_63 = arith.constant 6 : index
    %476 = memref.load %arg3[%c6_63] : memref<49xf32, #tpu.memory_space<smem>>
    %477 = vector.broadcast %476 : f32 to vector<1x256xf32>
    %478 = arith.mulf %477, %250 : vector<1x256xf32>
    %479 = arith.addf %475, %478 : vector<1x256xf32>
    %c13_64 = arith.constant 13 : index
    %480 = memref.load %arg3[%c13_64] : memref<49xf32, #tpu.memory_space<smem>>
    %481 = vector.broadcast %480 : f32 to vector<1x256xf32>
    %482 = arith.mulf %481, %255 : vector<1x256xf32>
    %483 = arith.addf %479, %482 : vector<1x256xf32>
    %c20_65 = arith.constant 20 : index
    %484 = memref.load %arg3[%c20_65] : memref<49xf32, #tpu.memory_space<smem>>
    %485 = vector.broadcast %484 : f32 to vector<1x256xf32>
    %486 = arith.mulf %485, %260 : vector<1x256xf32>
    %487 = arith.addf %483, %486 : vector<1x256xf32>
    %c27_66 = arith.constant 27 : index
    %488 = memref.load %arg3[%c27_66] : memref<49xf32, #tpu.memory_space<smem>>
    %489 = vector.broadcast %488 : f32 to vector<1x256xf32>
    %490 = arith.mulf %489, %265 : vector<1x256xf32>
    %491 = arith.addf %487, %490 : vector<1x256xf32>
    %c34_67 = arith.constant 34 : index
    %492 = memref.load %arg3[%c34_67] : memref<49xf32, #tpu.memory_space<smem>>
    %493 = vector.broadcast %492 : f32 to vector<1x256xf32>
    %494 = arith.mulf %493, %270 : vector<1x256xf32>
    %495 = arith.addf %491, %494 : vector<1x256xf32>
    %c41_68 = arith.constant 41 : index
    %496 = memref.load %arg3[%c41_68] : memref<49xf32, #tpu.memory_space<smem>>
    %497 = vector.broadcast %496 : f32 to vector<1x256xf32>
    %498 = arith.mulf %497, %275 : vector<1x256xf32>
    %499 = arith.addf %495, %498 : vector<1x256xf32>
    %c48_69 = arith.constant 48 : index
    %500 = memref.load %arg3[%c48_69] : memref<49xf32, #tpu.memory_space<smem>>
    %501 = vector.broadcast %500 : f32 to vector<1x256xf32>
    %502 = arith.mulf %501, %280 : vector<1x256xf32>
    %503 = arith.addf %499, %502 : vector<1x256xf32>
    %504 = math.tanh %503 : vector<1x256xf32>
    %505 = vector.broadcast %2 : f32 to vector<1x256xf32>
    %506 = arith.mulf %505, %250 : vector<1x256xf32>
    %507 = vector.broadcast %3 : f32 to vector<1x256xf32>
    %508 = arith.mulf %507, %312 : vector<1x256xf32>
    %509 = arith.addf %506, %508 : vector<1x256xf32>
    %510 = vector.broadcast %2 : f32 to vector<1x256xf32>
    %511 = arith.mulf %510, %255 : vector<1x256xf32>
    %512 = vector.broadcast %3 : f32 to vector<1x256xf32>
    %513 = arith.mulf %512, %344 : vector<1x256xf32>
    %514 = arith.addf %511, %513 : vector<1x256xf32>
    %515 = vector.broadcast %2 : f32 to vector<1x256xf32>
    %516 = arith.mulf %515, %260 : vector<1x256xf32>
    %517 = vector.broadcast %3 : f32 to vector<1x256xf32>
    %518 = arith.mulf %517, %376 : vector<1x256xf32>
    %519 = arith.addf %516, %518 : vector<1x256xf32>
    %520 = vector.broadcast %2 : f32 to vector<1x256xf32>
    %521 = arith.mulf %520, %265 : vector<1x256xf32>
    %522 = vector.broadcast %3 : f32 to vector<1x256xf32>
    %523 = arith.mulf %522, %408 : vector<1x256xf32>
    %524 = arith.addf %521, %523 : vector<1x256xf32>
    %525 = vector.broadcast %2 : f32 to vector<1x256xf32>
    %526 = arith.mulf %525, %270 : vector<1x256xf32>
    %527 = vector.broadcast %3 : f32 to vector<1x256xf32>
    %528 = arith.mulf %527, %440 : vector<1x256xf32>
    %529 = arith.addf %526, %528 : vector<1x256xf32>
    %530 = vector.broadcast %2 : f32 to vector<1x256xf32>
    %531 = arith.mulf %530, %275 : vector<1x256xf32>
    %532 = vector.broadcast %3 : f32 to vector<1x256xf32>
    %533 = arith.mulf %532, %472 : vector<1x256xf32>
    %534 = arith.addf %531, %533 : vector<1x256xf32>
    %535 = vector.broadcast %2 : f32 to vector<1x256xf32>
    %536 = arith.mulf %535, %280 : vector<1x256xf32>
    %537 = vector.broadcast %3 : f32 to vector<1x256xf32>
    %538 = arith.mulf %537, %504 : vector<1x256xf32>
    %539 = arith.addf %536, %538 : vector<1x256xf32>
    %c0_70 = arith.constant 0 : index
    %540 = memref.load %arg4[%c0_70] : memref<7xf32, #tpu.memory_space<smem>>
    %541 = vector.broadcast %540 : f32 to vector<1x256xf32>
    %542 = arith.addf %15, %541 : vector<1x256xf32>
    %c0_71 = arith.constant 0 : index
    %543 = memref.load %arg3[%c0_71] : memref<49xf32, #tpu.memory_space<smem>>
    %544 = vector.broadcast %543 : f32 to vector<1x256xf32>
    %545 = arith.mulf %544, %509 : vector<1x256xf32>
    %546 = arith.addf %542, %545 : vector<1x256xf32>
    %c7_72 = arith.constant 7 : index
    %547 = memref.load %arg3[%c7_72] : memref<49xf32, #tpu.memory_space<smem>>
    %548 = vector.broadcast %547 : f32 to vector<1x256xf32>
    %549 = arith.mulf %548, %514 : vector<1x256xf32>
    %550 = arith.addf %546, %549 : vector<1x256xf32>
    %c14_73 = arith.constant 14 : index
    %551 = memref.load %arg3[%c14_73] : memref<49xf32, #tpu.memory_space<smem>>
    %552 = vector.broadcast %551 : f32 to vector<1x256xf32>
    %553 = arith.mulf %552, %519 : vector<1x256xf32>
    %554 = arith.addf %550, %553 : vector<1x256xf32>
    %c21_74 = arith.constant 21 : index
    %555 = memref.load %arg3[%c21_74] : memref<49xf32, #tpu.memory_space<smem>>
    %556 = vector.broadcast %555 : f32 to vector<1x256xf32>
    %557 = arith.mulf %556, %524 : vector<1x256xf32>
    %558 = arith.addf %554, %557 : vector<1x256xf32>
    %c28_75 = arith.constant 28 : index
    %559 = memref.load %arg3[%c28_75] : memref<49xf32, #tpu.memory_space<smem>>
    %560 = vector.broadcast %559 : f32 to vector<1x256xf32>
    %561 = arith.mulf %560, %529 : vector<1x256xf32>
    %562 = arith.addf %558, %561 : vector<1x256xf32>
    %c35_76 = arith.constant 35 : index
    %563 = memref.load %arg3[%c35_76] : memref<49xf32, #tpu.memory_space<smem>>
    %564 = vector.broadcast %563 : f32 to vector<1x256xf32>
    %565 = arith.mulf %564, %534 : vector<1x256xf32>
    %566 = arith.addf %562, %565 : vector<1x256xf32>
    %c42_77 = arith.constant 42 : index
    %567 = memref.load %arg3[%c42_77] : memref<49xf32, #tpu.memory_space<smem>>
    %568 = vector.broadcast %567 : f32 to vector<1x256xf32>
    %569 = arith.mulf %568, %539 : vector<1x256xf32>
    %570 = arith.addf %566, %569 : vector<1x256xf32>
    %571 = math.tanh %570 : vector<1x256xf32>
    %c1_78 = arith.constant 1 : index
    %572 = memref.load %arg4[%c1_78] : memref<7xf32, #tpu.memory_space<smem>>
    %573 = vector.broadcast %572 : f32 to vector<1x256xf32>
    %574 = arith.addf %16, %573 : vector<1x256xf32>
    %c1_79 = arith.constant 1 : index
    %575 = memref.load %arg3[%c1_79] : memref<49xf32, #tpu.memory_space<smem>>
    %576 = vector.broadcast %575 : f32 to vector<1x256xf32>
    %577 = arith.mulf %576, %509 : vector<1x256xf32>
    %578 = arith.addf %574, %577 : vector<1x256xf32>
    %c8_80 = arith.constant 8 : index
    %579 = memref.load %arg3[%c8_80] : memref<49xf32, #tpu.memory_space<smem>>
    %580 = vector.broadcast %579 : f32 to vector<1x256xf32>
    %581 = arith.mulf %580, %514 : vector<1x256xf32>
    %582 = arith.addf %578, %581 : vector<1x256xf32>
    %c15_81 = arith.constant 15 : index
    %583 = memref.load %arg3[%c15_81] : memref<49xf32, #tpu.memory_space<smem>>
    %584 = vector.broadcast %583 : f32 to vector<1x256xf32>
    %585 = arith.mulf %584, %519 : vector<1x256xf32>
    %586 = arith.addf %582, %585 : vector<1x256xf32>
    %c22_82 = arith.constant 22 : index
    %587 = memref.load %arg3[%c22_82] : memref<49xf32, #tpu.memory_space<smem>>
    %588 = vector.broadcast %587 : f32 to vector<1x256xf32>
    %589 = arith.mulf %588, %524 : vector<1x256xf32>
    %590 = arith.addf %586, %589 : vector<1x256xf32>
    %c29_83 = arith.constant 29 : index
    %591 = memref.load %arg3[%c29_83] : memref<49xf32, #tpu.memory_space<smem>>
    %592 = vector.broadcast %591 : f32 to vector<1x256xf32>
    %593 = arith.mulf %592, %529 : vector<1x256xf32>
    %594 = arith.addf %590, %593 : vector<1x256xf32>
    %c36_84 = arith.constant 36 : index
    %595 = memref.load %arg3[%c36_84] : memref<49xf32, #tpu.memory_space<smem>>
    %596 = vector.broadcast %595 : f32 to vector<1x256xf32>
    %597 = arith.mulf %596, %534 : vector<1x256xf32>
    %598 = arith.addf %594, %597 : vector<1x256xf32>
    %c43_85 = arith.constant 43 : index
    %599 = memref.load %arg3[%c43_85] : memref<49xf32, #tpu.memory_space<smem>>
    %600 = vector.broadcast %599 : f32 to vector<1x256xf32>
    %601 = arith.mulf %600, %539 : vector<1x256xf32>
    %602 = arith.addf %598, %601 : vector<1x256xf32>
    %603 = math.tanh %602 : vector<1x256xf32>
    %c2_86 = arith.constant 2 : index
    %604 = memref.load %arg4[%c2_86] : memref<7xf32, #tpu.memory_space<smem>>
    %605 = vector.broadcast %604 : f32 to vector<1x256xf32>
    %606 = arith.addf %17, %605 : vector<1x256xf32>
    %c2_87 = arith.constant 2 : index
    %607 = memref.load %arg3[%c2_87] : memref<49xf32, #tpu.memory_space<smem>>
    %608 = vector.broadcast %607 : f32 to vector<1x256xf32>
    %609 = arith.mulf %608, %509 : vector<1x256xf32>
    %610 = arith.addf %606, %609 : vector<1x256xf32>
    %c9_88 = arith.constant 9 : index
    %611 = memref.load %arg3[%c9_88] : memref<49xf32, #tpu.memory_space<smem>>
    %612 = vector.broadcast %611 : f32 to vector<1x256xf32>
    %613 = arith.mulf %612, %514 : vector<1x256xf32>
    %614 = arith.addf %610, %613 : vector<1x256xf32>
    %c16_89 = arith.constant 16 : index
    %615 = memref.load %arg3[%c16_89] : memref<49xf32, #tpu.memory_space<smem>>
    %616 = vector.broadcast %615 : f32 to vector<1x256xf32>
    %617 = arith.mulf %616, %519 : vector<1x256xf32>
    %618 = arith.addf %614, %617 : vector<1x256xf32>
    %c23_90 = arith.constant 23 : index
    %619 = memref.load %arg3[%c23_90] : memref<49xf32, #tpu.memory_space<smem>>
    %620 = vector.broadcast %619 : f32 to vector<1x256xf32>
    %621 = arith.mulf %620, %524 : vector<1x256xf32>
    %622 = arith.addf %618, %621 : vector<1x256xf32>
    %c30_91 = arith.constant 30 : index
    %623 = memref.load %arg3[%c30_91] : memref<49xf32, #tpu.memory_space<smem>>
    %624 = vector.broadcast %623 : f32 to vector<1x256xf32>
    %625 = arith.mulf %624, %529 : vector<1x256xf32>
    %626 = arith.addf %622, %625 : vector<1x256xf32>
    %c37_92 = arith.constant 37 : index
    %627 = memref.load %arg3[%c37_92] : memref<49xf32, #tpu.memory_space<smem>>
    %628 = vector.broadcast %627 : f32 to vector<1x256xf32>
    %629 = arith.mulf %628, %534 : vector<1x256xf32>
    %630 = arith.addf %626, %629 : vector<1x256xf32>
    %c44_93 = arith.constant 44 : index
    %631 = memref.load %arg3[%c44_93] : memref<49xf32, #tpu.memory_space<smem>>
    %632 = vector.broadcast %631 : f32 to vector<1x256xf32>
    %633 = arith.mulf %632, %539 : vector<1x256xf32>
    %634 = arith.addf %630, %633 : vector<1x256xf32>
    %635 = math.tanh %634 : vector<1x256xf32>
    %c3_94 = arith.constant 3 : index
    %636 = memref.load %arg4[%c3_94] : memref<7xf32, #tpu.memory_space<smem>>
    %637 = vector.broadcast %636 : f32 to vector<1x256xf32>
    %638 = arith.addf %18, %637 : vector<1x256xf32>
    %c3_95 = arith.constant 3 : index
    %639 = memref.load %arg3[%c3_95] : memref<49xf32, #tpu.memory_space<smem>>
    %640 = vector.broadcast %639 : f32 to vector<1x256xf32>
    %641 = arith.mulf %640, %509 : vector<1x256xf32>
    %642 = arith.addf %638, %641 : vector<1x256xf32>
    %c10_96 = arith.constant 10 : index
    %643 = memref.load %arg3[%c10_96] : memref<49xf32, #tpu.memory_space<smem>>
    %644 = vector.broadcast %643 : f32 to vector<1x256xf32>
    %645 = arith.mulf %644, %514 : vector<1x256xf32>
    %646 = arith.addf %642, %645 : vector<1x256xf32>
    %c17_97 = arith.constant 17 : index
    %647 = memref.load %arg3[%c17_97] : memref<49xf32, #tpu.memory_space<smem>>
    %648 = vector.broadcast %647 : f32 to vector<1x256xf32>
    %649 = arith.mulf %648, %519 : vector<1x256xf32>
    %650 = arith.addf %646, %649 : vector<1x256xf32>
    %c24_98 = arith.constant 24 : index
    %651 = memref.load %arg3[%c24_98] : memref<49xf32, #tpu.memory_space<smem>>
    %652 = vector.broadcast %651 : f32 to vector<1x256xf32>
    %653 = arith.mulf %652, %524 : vector<1x256xf32>
    %654 = arith.addf %650, %653 : vector<1x256xf32>
    %c31_99 = arith.constant 31 : index
    %655 = memref.load %arg3[%c31_99] : memref<49xf32, #tpu.memory_space<smem>>
    %656 = vector.broadcast %655 : f32 to vector<1x256xf32>
    %657 = arith.mulf %656, %529 : vector<1x256xf32>
    %658 = arith.addf %654, %657 : vector<1x256xf32>
    %c38_100 = arith.constant 38 : index
    %659 = memref.load %arg3[%c38_100] : memref<49xf32, #tpu.memory_space<smem>>
    %660 = vector.broadcast %659 : f32 to vector<1x256xf32>
    %661 = arith.mulf %660, %534 : vector<1x256xf32>
    %662 = arith.addf %658, %661 : vector<1x256xf32>
    %c45_101 = arith.constant 45 : index
    %663 = memref.load %arg3[%c45_101] : memref<49xf32, #tpu.memory_space<smem>>
    %664 = vector.broadcast %663 : f32 to vector<1x256xf32>
    %665 = arith.mulf %664, %539 : vector<1x256xf32>
    %666 = arith.addf %662, %665 : vector<1x256xf32>
    %667 = math.tanh %666 : vector<1x256xf32>
    %c4_102 = arith.constant 4 : index
    %668 = memref.load %arg4[%c4_102] : memref<7xf32, #tpu.memory_space<smem>>
    %669 = vector.broadcast %668 : f32 to vector<1x256xf32>
    %670 = arith.addf %19, %669 : vector<1x256xf32>
    %c4_103 = arith.constant 4 : index
    %671 = memref.load %arg3[%c4_103] : memref<49xf32, #tpu.memory_space<smem>>
    %672 = vector.broadcast %671 : f32 to vector<1x256xf32>
    %673 = arith.mulf %672, %509 : vector<1x256xf32>
    %674 = arith.addf %670, %673 : vector<1x256xf32>
    %c11_104 = arith.constant 11 : index
    %675 = memref.load %arg3[%c11_104] : memref<49xf32, #tpu.memory_space<smem>>
    %676 = vector.broadcast %675 : f32 to vector<1x256xf32>
    %677 = arith.mulf %676, %514 : vector<1x256xf32>
    %678 = arith.addf %674, %677 : vector<1x256xf32>
    %c18_105 = arith.constant 18 : index
    %679 = memref.load %arg3[%c18_105] : memref<49xf32, #tpu.memory_space<smem>>
    %680 = vector.broadcast %679 : f32 to vector<1x256xf32>
    %681 = arith.mulf %680, %519 : vector<1x256xf32>
    %682 = arith.addf %678, %681 : vector<1x256xf32>
    %c25_106 = arith.constant 25 : index
    %683 = memref.load %arg3[%c25_106] : memref<49xf32, #tpu.memory_space<smem>>
    %684 = vector.broadcast %683 : f32 to vector<1x256xf32>
    %685 = arith.mulf %684, %524 : vector<1x256xf32>
    %686 = arith.addf %682, %685 : vector<1x256xf32>
    %c32_107 = arith.constant 32 : index
    %687 = memref.load %arg3[%c32_107] : memref<49xf32, #tpu.memory_space<smem>>
    %688 = vector.broadcast %687 : f32 to vector<1x256xf32>
    %689 = arith.mulf %688, %529 : vector<1x256xf32>
    %690 = arith.addf %686, %689 : vector<1x256xf32>
    %c39_108 = arith.constant 39 : index
    %691 = memref.load %arg3[%c39_108] : memref<49xf32, #tpu.memory_space<smem>>
    %692 = vector.broadcast %691 : f32 to vector<1x256xf32>
    %693 = arith.mulf %692, %534 : vector<1x256xf32>
    %694 = arith.addf %690, %693 : vector<1x256xf32>
    %c46_109 = arith.constant 46 : index
    %695 = memref.load %arg3[%c46_109] : memref<49xf32, #tpu.memory_space<smem>>
    %696 = vector.broadcast %695 : f32 to vector<1x256xf32>
    %697 = arith.mulf %696, %539 : vector<1x256xf32>
    %698 = arith.addf %694, %697 : vector<1x256xf32>
    %699 = math.tanh %698 : vector<1x256xf32>
    %c5_110 = arith.constant 5 : index
    %700 = memref.load %arg4[%c5_110] : memref<7xf32, #tpu.memory_space<smem>>
    %701 = vector.broadcast %700 : f32 to vector<1x256xf32>
    %702 = arith.addf %20, %701 : vector<1x256xf32>
    %c5_111 = arith.constant 5 : index
    %703 = memref.load %arg3[%c5_111] : memref<49xf32, #tpu.memory_space<smem>>
    %704 = vector.broadcast %703 : f32 to vector<1x256xf32>
    %705 = arith.mulf %704, %509 : vector<1x256xf32>
    %706 = arith.addf %702, %705 : vector<1x256xf32>
    %c12_112 = arith.constant 12 : index
    %707 = memref.load %arg3[%c12_112] : memref<49xf32, #tpu.memory_space<smem>>
    %708 = vector.broadcast %707 : f32 to vector<1x256xf32>
    %709 = arith.mulf %708, %514 : vector<1x256xf32>
    %710 = arith.addf %706, %709 : vector<1x256xf32>
    %c19_113 = arith.constant 19 : index
    %711 = memref.load %arg3[%c19_113] : memref<49xf32, #tpu.memory_space<smem>>
    %712 = vector.broadcast %711 : f32 to vector<1x256xf32>
    %713 = arith.mulf %712, %519 : vector<1x256xf32>
    %714 = arith.addf %710, %713 : vector<1x256xf32>
    %c26_114 = arith.constant 26 : index
    %715 = memref.load %arg3[%c26_114] : memref<49xf32, #tpu.memory_space<smem>>
    %716 = vector.broadcast %715 : f32 to vector<1x256xf32>
    %717 = arith.mulf %716, %524 : vector<1x256xf32>
    %718 = arith.addf %714, %717 : vector<1x256xf32>
    %c33_115 = arith.constant 33 : index
    %719 = memref.load %arg3[%c33_115] : memref<49xf32, #tpu.memory_space<smem>>
    %720 = vector.broadcast %719 : f32 to vector<1x256xf32>
    %721 = arith.mulf %720, %529 : vector<1x256xf32>
    %722 = arith.addf %718, %721 : vector<1x256xf32>
    %c40_116 = arith.constant 40 : index
    %723 = memref.load %arg3[%c40_116] : memref<49xf32, #tpu.memory_space<smem>>
    %724 = vector.broadcast %723 : f32 to vector<1x256xf32>
    %725 = arith.mulf %724, %534 : vector<1x256xf32>
    %726 = arith.addf %722, %725 : vector<1x256xf32>
    %c47_117 = arith.constant 47 : index
    %727 = memref.load %arg3[%c47_117] : memref<49xf32, #tpu.memory_space<smem>>
    %728 = vector.broadcast %727 : f32 to vector<1x256xf32>
    %729 = arith.mulf %728, %539 : vector<1x256xf32>
    %730 = arith.addf %726, %729 : vector<1x256xf32>
    %731 = math.tanh %730 : vector<1x256xf32>
    %c6_118 = arith.constant 6 : index
    %732 = memref.load %arg4[%c6_118] : memref<7xf32, #tpu.memory_space<smem>>
    %733 = vector.broadcast %732 : f32 to vector<1x256xf32>
    %734 = arith.addf %21, %733 : vector<1x256xf32>
    %c6_119 = arith.constant 6 : index
    %735 = memref.load %arg3[%c6_119] : memref<49xf32, #tpu.memory_space<smem>>
    %736 = vector.broadcast %735 : f32 to vector<1x256xf32>
    %737 = arith.mulf %736, %509 : vector<1x256xf32>
    %738 = arith.addf %734, %737 : vector<1x256xf32>
    %c13_120 = arith.constant 13 : index
    %739 = memref.load %arg3[%c13_120] : memref<49xf32, #tpu.memory_space<smem>>
    %740 = vector.broadcast %739 : f32 to vector<1x256xf32>
    %741 = arith.mulf %740, %514 : vector<1x256xf32>
    %742 = arith.addf %738, %741 : vector<1x256xf32>
    %c20_121 = arith.constant 20 : index
    %743 = memref.load %arg3[%c20_121] : memref<49xf32, #tpu.memory_space<smem>>
    %744 = vector.broadcast %743 : f32 to vector<1x256xf32>
    %745 = arith.mulf %744, %519 : vector<1x256xf32>
    %746 = arith.addf %742, %745 : vector<1x256xf32>
    %c27_122 = arith.constant 27 : index
    %747 = memref.load %arg3[%c27_122] : memref<49xf32, #tpu.memory_space<smem>>
    %748 = vector.broadcast %747 : f32 to vector<1x256xf32>
    %749 = arith.mulf %748, %524 : vector<1x256xf32>
    %750 = arith.addf %746, %749 : vector<1x256xf32>
    %c34_123 = arith.constant 34 : index
    %751 = memref.load %arg3[%c34_123] : memref<49xf32, #tpu.memory_space<smem>>
    %752 = vector.broadcast %751 : f32 to vector<1x256xf32>
    %753 = arith.mulf %752, %529 : vector<1x256xf32>
    %754 = arith.addf %750, %753 : vector<1x256xf32>
    %c41_124 = arith.constant 41 : index
    %755 = memref.load %arg3[%c41_124] : memref<49xf32, #tpu.memory_space<smem>>
    %756 = vector.broadcast %755 : f32 to vector<1x256xf32>
    %757 = arith.mulf %756, %534 : vector<1x256xf32>
    %758 = arith.addf %754, %757 : vector<1x256xf32>
    %c48_125 = arith.constant 48 : index
    %759 = memref.load %arg3[%c48_125] : memref<49xf32, #tpu.memory_space<smem>>
    %760 = vector.broadcast %759 : f32 to vector<1x256xf32>
    %761 = arith.mulf %760, %539 : vector<1x256xf32>
    %762 = arith.addf %758, %761 : vector<1x256xf32>
    %763 = math.tanh %762 : vector<1x256xf32>
    %c0_i32 = arith.constant 0 : i32
    %764 = vector.broadcast %c0_i32 : i32 to vector<1x256xi32>
    %765 = arith.cmpf ogt, %603, %571 : vector<1x256xf32>
    %766 = arith.select %765, %603, %571 : vector<1x256xi1>, vector<1x256xf32>
    %c1_i32 = arith.constant 1 : i32
    %767 = vector.broadcast %c1_i32 : i32 to vector<1x256xi32>
    %768 = arith.select %765, %767, %764 : vector<1x256xi1>, vector<1x256xi32>
    %769 = arith.cmpf ogt, %635, %766 : vector<1x256xf32>
    %770 = arith.select %769, %635, %766 : vector<1x256xi1>, vector<1x256xf32>
    %c2_i32 = arith.constant 2 : i32
    %771 = vector.broadcast %c2_i32 : i32 to vector<1x256xi32>
    %772 = arith.select %769, %771, %768 : vector<1x256xi1>, vector<1x256xi32>
    %773 = arith.cmpf ogt, %667, %770 : vector<1x256xf32>
    %774 = arith.select %773, %667, %770 : vector<1x256xi1>, vector<1x256xf32>
    %c3_i32 = arith.constant 3 : i32
    %775 = vector.broadcast %c3_i32 : i32 to vector<1x256xi32>
    %776 = arith.select %773, %775, %772 : vector<1x256xi1>, vector<1x256xi32>
    %777 = arith.cmpf ogt, %699, %774 : vector<1x256xf32>
    %778 = arith.select %777, %699, %774 : vector<1x256xi1>, vector<1x256xf32>
    %c4_i32 = arith.constant 4 : i32
    %779 = vector.broadcast %c4_i32 : i32 to vector<1x256xi32>
    %780 = arith.select %777, %779, %776 : vector<1x256xi1>, vector<1x256xi32>
    %781 = arith.cmpf ogt, %731, %778 : vector<1x256xf32>
    %782 = arith.select %781, %731, %778 : vector<1x256xi1>, vector<1x256xf32>
    %c5_i32 = arith.constant 5 : i32
    %783 = vector.broadcast %c5_i32 : i32 to vector<1x256xi32>
    %784 = arith.select %781, %783, %780 : vector<1x256xi1>, vector<1x256xi32>
    %785 = arith.cmpf ogt, %763, %782 : vector<1x256xf32>
    %c6_i32 = arith.constant 6 : i32
    %786 = vector.broadcast %c6_i32 : i32 to vector<1x256xi32>
    %787 = arith.select %785, %786, %784 : vector<1x256xi1>, vector<1x256xi32>
    %c0_126 = arith.constant 0 : index
    %c0_127 = arith.constant 0 : index
    %c0_128 = arith.constant 0 : index
    %788 = vector.load %arg7[%c0_126, %c0_127, %c0_128] : memref<1x1x256xi32, #tpu.memory_space<vmem>>, vector<1x1x256xi32>
    %789 = vector.shape_cast %788 : vector<1x1x256xi32> to vector<1x256xi32>
    %790 = vector.shape_cast %787 : vector<1x256xi32> to vector<1x1x256xi32>
    tpu.vector_store %arg7[%c0_126, %c0_127, %c0_128], %790 {strides = array<i32>} : memref<1x1x256xi32, #tpu.memory_space<vmem>>, vector<1x1x256xi32>,
    return
  }
  func.func @transform_0(%arg0: i32, %arg1: i32, %arg2: memref<2xf32, #tpu.memory_space<smem>>, %arg3: memref<49xf32, #tpu.memory_space<smem>>, %arg4: memref<7xf32, #tpu.memory_space<smem>>) -> (i32, i32, i32) {
    %c0_i32 = arith.constant 0 : i32
    %c0_i32_0 = arith.constant 0 : i32
    return %arg0, %c0_i32, %arg1 : i32, i32, i32
  }
  func.func @transform_1(%arg0: i32, %arg1: i32, %arg2: memref<2xf32, #tpu.memory_space<smem>>, %arg3: memref<49xf32, #tpu.memory_space<smem>>, %arg4: memref<7xf32, #tpu.memory_space<smem>>) -> (i32, i32, i32) {
    %c0_i32 = arith.constant 0 : i32
    %c0_i32_0 = arith.constant 0 : i32
    return %arg0, %c0_i32, %arg1 : i32, i32, i32
  }
  func.func @transform_2(%arg0: i32, %arg1: i32, %arg2: memref<2xf32, #tpu.memory_space<smem>>, %arg3: memref<49xf32, #tpu.memory_space<smem>>, %arg4: memref<7xf32, #tpu.memory_space<smem>>) -> (i32, i32, i32) {
    %c0_i32 = arith.constant 0 : i32
    %c0_i32_0 = arith.constant 0 : i32
    return %arg0, %c0_i32, %arg1 : i32, i32, i32
  }
}

</mosaic_0001>

<bundles_post_ra>
// kernel: tpu_custom_call.1
= control target key start
LH: loop header
LB: loop body
LE: loop exit
PB: predicated region body
PF: predicated region fallthrough
CT: control target
= control target key end

     0   :  { %s2354_s24 = smov [#allocation3]   ;;  %s2355_s25 = smov [#allocation4]   ;;  %s3633_s0 = inlined_call_operand.vmem [shape: f32[2], index: 0, kind: input, shape index: {}]   ;;  %s3634_s3 = inlined_call_operand.vmem [shape: f32[2,7,256], index: 3, kind: input, shape index: {}]   ;;  %s3635_s4 = inlined_call_operand.vmem [shape: f32[2,7,256], index: 4, kind: input, shape index: {}]   ;;  %s3636_s5 = inlined_call_operand.hbm [shape: s32[2,1,256], index: 5, kind: output, shape index: {}]   ;;  %s3637_s1 = inlined_call_operand.vmem [shape: f32[49], index: 1, kind: input, shape index: {}]   ;;  %s3638_s2 = inlined_call_operand.vmem [shape: f32[7], index: 2, kind: input, shape index: {}]  }
   0x1   :  { %s11_s20 = sshll.u32 %s3633_s0, 4  ;;  %s16_s23 = sshll.u32 %s3637_s1, 4  ;;  %s12_s20 = int_to_ptr.vmem [resolvable:$true] %s11_s20  ;;  %s17_s23 = int_to_ptr.vmem [resolvable:$true] %s16_s23 }
   0x2   :  { %14 = dma.vmem_to_smem %s12_s20, 16, %s2354_s24, [#allocation2] }
   0x3   :  { %19 = dma.vmem_to_smem %s17_s23, 16, %s2355_s25, [#allocation2] }
   0x4   :  { %s21_s28 = sshll.u32 %s3638_s2, 4  ;;  %s2356_s29 = smov [#allocation5]   ;;  %s22_s28 = int_to_ptr.vmem [resolvable:$true] %s21_s28 }
   0x5   :  { %24 = dma.vmem_to_smem %s22_s28, 16, %s2356_s29, [#allocation2] }
   0x6   :  { %2324 = dma.done.wait [#allocation2], 48 }
   0x7   :  { %2325 = vsyncadd [#allocation2], 4294967248 }
   0x8   :  { %27 = sfence }
   0x9   :  { %28 = vsyncpa [#allocation7], 0 }
   0xa   :  { %30 = vsyncpa [#allocation7 + $0x1], 0  ;;  %s2397_s0 = smov 0   ;;  %s2399_s1 = smov 0  }
   0xb   :  { %s2401_s30 = smov 0   ;;  %s2403_s6 = smov 0  }
   0xc   :  { %s2405_s7 = smov 0   ;;  %s2407_s8 = smov 0  }
   0xd LB: > { %s2023_s2 = sadd.s32 4294967295, %s2352_s8   ;;  %s2024_s9 = sadd.s32 4294967294, %s2352_s8   ;;  %s2352_s8 = sphi %s2407_s8, %s36_s8   ;;  %s2348_s7 = sphi %s2405_s7, %s3896_s7   ;;  %s2344_s6 = sphi %s2403_s6, %s3895_s6   ;;  %s2340_s30 = sphi %s2401_s30, %s3894_s30   ;;  %s2336_s1 = sphi %s2399_s1, %s3893_s1   ;;  %s2332_s0 = sphi %s2397_s0, %s3892_s0  }
   0xe   : > { %s48_s10 = sadd.s32 1, %s2348_s7  ;;  %s113_s11 = sadd.s32 1, %s2340_s30 }
   0xf   : > { %p50_p0 = scmp.ge.s32.totalorder %s48_s10, 2  ;;  %p123_p1 = scmp.ne.s32.totalorder %s2340_s30, %s2336_s1 }
  0x10   : > { %p124_p2 = scmp.eq.s32.totalorder %s2023_s2, 1  ;;  %p129_p3 = scmp.ne.s32.totalorder %s2336_s1, %s2332_s0 }
  0x11   : > { %s3898_s10 = smov (%p50_p0, %s48_s10), 0  ;;  %p130_p5 = scmp.eq.s32.totalorder %s2024_s9, 1 }
  0x12   : > { %p2437_p4 = por %p124_p2, %p123_p1  ;;  %s108_s13 = ssub.s32 %s2348_s7, %s3898_s10 }
  0x13   : > { %p2027_p6 = scmp.ge.s32.totalorder %s2352_s8, 1  ;;  %p111_p7 = scmp.eq.s32.totalorder %s108_s13, 0 }
  0x14   : > { %p2444_p8 = por %p130_p5, %p129_p3  ;;  %p174_p9 = scmp.lt.s32.totalorder %s2352_s8, 3 }
  0x15   : > { %s2450_s15 = scalar_select %p111_p7, %s2340_s30, %s113_s11  }
  0x16   : > { %p175_p10 = pnand %p2027_p6, %p174_p9 }
  0x18   : > { %178 = sbr.rel (%p175_p10) target bundleno = 327 (0x147), region = 28 }
  0x1d   : > { %p210_p11 = scmp.lt.s32.totalorder %s2344_s6, 1  ;;  %s237_s16 = sld [smem:[#allocation5]] }
  0x1e   : > { %s241_s18 = sld [smem:[#allocation4]] }
  0x1f   : > { %s211_s17 = scalar_select %p210_p11, %s2344_s6, 1 }
  0x20   : > { %s2033_s20 = sld [smem:[#allocation4 + $0x7]] }
  0x21   : > { %s2091_s19 = sshll.u32 %s211_s17, 4  ;;  %s2034_s27 = sld [smem:[#allocation4 + $0xe]] }
  0x22   : > { %s217_s23 = scalar_lea.vmem %s3634_s3, %s2091_s19  ;;  %s227_s26 = scalar_lea.vmem %s3635_s4, %s2091_s19 }
  0x23   : > { %v2460_v0 = vld [vmem:[%s217_s23] sm:$0x7f]  ;;  %v2462_v1 = vld [vmem:[%s217_s23 + $0x8] sm:$0x7f]  ;;  %v238_v4 = vstv %s237_s16  ;;  %s2035_s28 = sld [smem:[#allocation4 + $0x15]] }
  0x24   : > { %v2464_v2 = vld [vmem:[%s227_s26] sm:$0x7f]  ;;  %v2466_v3 = vld [vmem:[%s227_s26 + $0x8] sm:$0x7f]  ;;  %v2474_v7 = vstv %s241_s18  ;;  %s2036_s29 = sld [smem:[#allocation4 + $0x1c]] }
  0x25   : > { %v2469_v5 = vadd.f32 %v238_v4, %v2464_v2  ;;  %v2472_v6 = vadd.f32 %v238_v4, %v2466_v3  ;;  %v243_v8 = vmul.f32 %v2474_v7, %v2460_v0  ;;  %v244_v9 = vmul.f32 %v2474_v7, %v2462_v1  ;;  %s2037_s2 = sld [smem:[#allocation4 + $0x23]] }
  0x26   : > { %v2480_v10 = vstv %s2033_s20  ;;  %s2038_s9 = sld [smem:[#allocation4 + $0x2a]] }
  0x27   : > { %3761 = vst [vmem:[#allocation10_spill] sm:$0xff] %v2469_v5  ;;  %v249_v11 = vmul.f32 %v2480_v10, %v2460_v0  ;;  %v250_v12 = vmul.f32 %v2480_v10, %v2462_v1  ;;  %v245_v13 = vadd.f32 %v243_v8, %v2469_v5  ;;  %v246_v14 = vadd.f32 %v244_v9, %v2472_v6  ;;  %s2490_s11 = sld [smem:[#allocation5 + $0x1]] }
  0x28   : > { %3762 = vst [vmem:[#allocation11_spill] sm:$0xff] %v2472_v6  ;;  %v2488_v17 = vstv %s2034_s27  ;;  %s2496_s13 = sld [smem:[#allocation4 + $0x1]] }
  0x29   : > { %3763 = vst [vmem:[#allocation12_spill] sm:$0xff] %v2480_v10  ;;  %v253_v15 = vrot.slane %v249_v11, 1  ;;  %v254_v16 = vrot.slane %v250_v12, 1  ;;  %v261_v18 = vmul.f32 %v2488_v17, %v2460_v0  ;;  %v262_v19 = vmul.f32 %v2488_v17, %v2462_v1  ;;  %s2500_s16 = sld [smem:[#allocation4 + $0x8]] }
  0x2a   : > { %3764 = vst [vmem:[#allocation13_spill] sm:$0xff] %v2488_v17  ;;  %v2498_v22 = vstv %s2035_s28  ;;  %v2506_v27 = vstv %s2036_s29  ;;  %s2510_s17 = sld [smem:[#allocation4 + $0xf]] }
  0x2b   : > { %v257_v20 = vadd.f32 %v253_v15, %v245_v13  ;;  %v258_v21 = vadd.f32 %v254_v16, %v246_v14  ;;  %3765 = vst [vmem:[#allocation14_spill] sm:$0xff] %v2498_v22  ;;  %v265_v23 = vrot.slane %v261_v18, 2  ;;  %v266_v24 = vrot.slane %v262_v19, 2  ;;  %s2512_s18 = sld [smem:[#allocation4 + $0x16]] }
  0x2c   : > { %v273_v25 = vmul.f32 %v2498_v22, %v2460_v0  ;;  %v274_v26 = vmul.f32 %v2498_v22, %v2462_v1  ;;  %v2508_v28 = vstv %s2037_s2  ;;  %v285_v33 = vmul.f32 %v2506_v27, %v2460_v0  ;;  %s2525_s19 = sld [smem:[#allocation4 + $0x1d]] }
  0x2d   : > { %v269_v29 = vadd.f32 %v265_v23, %v257_v20  ;;  %v270_v30 = vadd.f32 %v266_v24, %v258_v21  ;;  %v286_v34 = vmul.f32 %v2506_v27, %v2462_v1  ;;  %v297_v35 = vmul.f32 %v2508_v28, %v2460_v0  ;;  %s2543_s20 = sld [smem:[#allocation4 + $0x24]] }
  0x2e   : > { %v277_v31 = vrot.slane %v273_v25, 3  ;;  %v278_v32 = vrot.slane %v274_v26, 3  ;;  %v298_v36 = vmul.f32 %v2508_v28, %v2462_v1  ;;  %v2522_v39 = vstv %s2038_s9  ;;  %s2549_s21 = sld [smem:[#allocation4 + $0x2b]] }
  0x2f   : > { %v322_v40 = vstv %s2490_s11  ;;  %v289_v41 = vrot.slane %v285_v33, 4  ;;  %v290_v42 = vrot.slane %v286_v34, 4  ;;  %v301_v43 = vrot.slane %v297_v35, 5  ;;  %s2555_s22 = sld [smem:[#allocation5 + $0x2]] }
  0x30   : > { %v281_v37 = vadd.f32 %v277_v31, %v269_v29  ;;  %v282_v38 = vadd.f32 %v278_v32, %v270_v30  ;;  %v302_v44 = vrot.slane %v298_v36, 5  ;;  %v309_v45 = vmul.f32 %v2522_v39, %v2460_v0  ;;  %s2567_s23 = sld [smem:[#allocation4 + $0x2]] }
  0x31   : > { %v310_v46 = vmul.f32 %v2522_v39, %v2462_v1  ;;  %v2532_v47 = vadd.f32 %v322_v40, %v2464_v2  ;;  %v2535_v48 = vadd.f32 %v322_v40, %v2466_v3  ;;  %v2538_v51 = vstv %s2496_s13  ;;  %s2575_s24 = sld [smem:[#allocation4 + $0x9]] }
  0x32   : > { %v293_v49 = vadd.f32 %v289_v41, %v281_v37  ;;  %v294_v50 = vadd.f32 %v290_v42, %v282_v38  ;;  %3767 = vst [vmem:[#allocation16_spill] sm:$0xff] %v2538_v51  ;;  %v2541_v52 = vstv %s2500_s16  ;;  %v313_v53 = vrot.slane %v309_v45, 6  ;;  %s2580_s25 = sld [smem:[#allocation4 + $0x10]] }
  0x33   : > { %3766 = vst [vmem:[#allocation15_spill] sm:$0xff] %v2532_v47  ;;  %v314_v54 = vrot.slane %v310_v46, 6  ;;  %v327_v55 = vmul.f32 %v2538_v51, %v2460_v0  ;;  %v328_v56 = vmul.f32 %v2538_v51, %v2462_v1  ;;  %v339_v59 = vmul.f32 %v2541_v52, %v2460_v0  ;;  %s2589_s26 = sld [smem:[#allocation4 + $0x17]] }
  0x34   : > { %3768 = vst [vmem:[#allocation17_spill] sm:$0xff] %v2541_v52  ;;  %v305_v57 = vadd.f32 %v301_v43, %v293_v49  ;;  %v306_v58 = vadd.f32 %v302_v44, %v294_v50  ;;  %v340_v60 = vmul.f32 %v2541_v52, %v2462_v1  ;;  %v2558_v63 = vstv %s2510_s17  ;;  %s2599_s27 = sld [smem:[#allocation4 + $0x1e]] }
  0x35   : > { %v331_v61 = vrot.slane %v327_v55, 7  ;;  %v332_v62 = vrot.slane %v328_v56, 7  ;;  %3769 = vst [vmem:[#allocation18_spill] sm:$0xff] %v2558_v63  ;;  %v2561_v4 = vstv %s2512_s18  ;;  %v345_v11 = vmul.f32 %v2558_v63, %v2460_v0  ;;  %s2621_s28 = sld [smem:[#allocation4 + $0x25]] }
  0x36   : > { %v317_v8 = vadd.f32 %v313_v53, %v305_v57  ;;  %v318_v9 = vadd.f32 %v314_v54, %v306_v58  ;;  %v346_v12 = vmul.f32 %v2558_v63, %v2462_v1  ;;  %v357_v15 = vmul.f32 %v2561_v4, %v2460_v0  ;;  %s2627_s29 = sld [smem:[#allocation4 + $0x2c]] }
  0x37   : > { %v335_v13 = vadd.f32 %v331_v61, %v2532_v47  ;;  %v336_v14 = vadd.f32 %v332_v62, %v2535_v48  ;;  %v358_v16 = vmul.f32 %v2561_v4, %v2462_v1  ;;  %v349_v18 = vrot.slane %v345_v11, 1  ;;  %s2633_s2 = sld [smem:[#allocation5 + $0x3]] }
  0x38   : > { %2152 = vtanh.f32 %v317_v8  ;;  %v350_v19 = vrot.slane %v346_v12, 1  ;;  %v2578_v20 = vstv %s2525_s19  ;;  %v361_v24 = vrot.slane %v357_v15, 2  ;;  %s2647_s9 = sld [smem:[#allocation4 + $0x3]] }
  0x39   : > { %2154 = vtanh.f32 %v318_v9  ;;  %v341_v21 = vadd.f32 %v339_v59, %v335_v13  ;;  %v342_v23 = vadd.f32 %v340_v60, %v336_v14  ;;  %v362_v25 = vrot.slane %v358_v16, 2  ;;  %s2656_s11 = sld [smem:[#allocation4 + $0xa]] }
  0x3a   : > { %v369_v26 = vmul.f32 %v2578_v20, %v2460_v0  ;;  %v370_v29 = vmul.f32 %v2578_v20, %v2462_v1  ;;  %v2587_v30 = vstv %s2543_s20  ;;  %v2596_v37 = vstv %s2549_s21  ;;  %s2660_s13 = sld [smem:[#allocation4 + $0x11]] }
  0x3b   : > { %v353_v31 = vadd.f32 %v349_v18, %v341_v21  ;;  %v354_v32 = vadd.f32 %v350_v19, %v342_v23  ;;  %v381_v33 = vmul.f32 %v2587_v30, %v2460_v0  ;;  %v382_v34 = vmul.f32 %v2587_v30, %v2462_v1  ;;  %s2667_s16 = sld [smem:[#allocation4 + $0x18]] }
  0x3c   : > { %v373_v35 = vrot.slane %v369_v26, 3  ;;  %v374_v36 = vrot.slane %v370_v29, 3  ;;  %v406_v38 = vstv %s2555_s22  ;;  %v393_v45 = vmul.f32 %v2596_v37, %v2460_v0  ;;  %s2679_s17 = sld [smem:[#allocation4 + $0x1f]] }
  0x3d   : > { %v365_v40 = vadd.f32 %v361_v24, %v353_v31  ;;  %v366_v41 = vadd.f32 %v362_v25, %v354_v32  ;;  %v385_v42 = vrot.slane %v381_v33, 4  ;;  %v386_v43 = vrot.slane %v382_v34, 4  ;;  %s2696_s18 = sld [smem:[#allocation4 + $0x26]] }
  0x3e   : > { %v2601_v44 = vpop.eup %2152  ;;  %v394_v46 = vmul.f32 %v2596_v37, %v2462_v1  ;;  %v2608_v49 = vadd.f32 %v406_v38, %v2464_v2  ;;  %v2611_v50 = vadd.f32 %v406_v38, %v2466_v3  ;;  %v2616_v56 = vstv %s2567_s23  ;;  %s2705_s19 = sld [smem:[#allocation4 + $0x2d]] }
  0x3f   : > { %v2613_v53 = vpop.eup %2154  ;;  %v377_v54 = vadd.f32 %v373_v35, %v365_v40  ;;  %v378_v55 = vadd.f32 %v374_v36, %v366_v41  ;;  %v2619_v57 = vstv %s2575_s24  ;;  %v397_v58 = vrot.slane %v393_v45, 5  ;;  %s2717_s20 = sld [smem:[#allocation5 + $0x4]] }
  0x40   : > { %3770 = vst [vmem:[#allocation19_spill] sm:$0xff] %v2608_v49  ;;  %v398_v59 = vrot.slane %v394_v46, 5  ;;  %v411_v60 = vmul.f32 %v2616_v56, %v2460_v0  ;;  %v412_v61 = vmul.f32 %v2616_v56, %v2462_v1  ;;  %v423_v9 = vmul.f32 %v2619_v57, %v2460_v0  ;;  %s2719_s21 = sld [smem:[#allocation4 + $0x4]] }
  0x41   : > { %3771 = vst [vmem:[#allocation20_spill] sm:$0xff] %v2611_v50  ;;  %v389_v62 = vadd.f32 %v385_v42, %v377_v54  ;;  %v390_v8 = vadd.f32 %v386_v43, %v378_v55  ;;  %v424_v11 = vmul.f32 %v2619_v57, %v2462_v1  ;;  %v2636_v14 = vstv %s2580_s25  ;;  %s2734_s22 = sld [smem:[#allocation4 + $0xb]] }
  0x42   : > { %3772 = vst [vmem:[#allocation21_spill] sm:$0xff] %v2619_v57  ;;  %v415_v12 = vrot.slane %v411_v60, 6  ;;  %v416_v13 = vrot.slane %v412_v61, 6  ;;  %v2639_v15 = vstv %s2589_s26  ;;  %v427_v19 = vrot.slane %v423_v9, 7  ;;  %s2736_s23 = sld [smem:[#allocation4 + $0x12]] }
  0x43   : > { %3773 = vst [vmem:[#allocation22_spill] sm:$0xff] %v2636_v14  ;;  %v401_v16 = vadd.f32 %v397_v58, %v389_v62  ;;  %v402_v18 = vadd.f32 %v398_v59, %v390_v8  ;;  %v428_v21 = vrot.slane %v424_v11, 7  ;;  %v435_v25 = vmul.f32 %v2636_v14, %v2460_v0  ;;  %s2754_s24 = sld [smem:[#allocation4 + $0x19]] }
  0x44   : > { %3774 = vst [vmem:[#allocation23_spill] sm:$0xff] %v2639_v15  ;;  %v419_v23 = vadd.f32 %v415_v12, %v2608_v49  ;;  %v420_v24 = vadd.f32 %v416_v13, %v2611_v50  ;;  %v436_v26 = vmul.f32 %v2636_v14, %v2462_v1  ;;  %v441_v29 = vmul.f32 %v2639_v15, %v2460_v0  ;;  %s2758_s25 = sld [smem:[#allocation4 + $0x20]] }
  0x45   : > { %2156 = vtanh.f32 %v401_v16  ;;  %v442_v31 = vmul.f32 %v2639_v15, %v2462_v1  ;;  %v2654_v32 = vstv %s2599_s27  ;;  %v2665_v41 = vstv %s2621_s28  ;;  %s2774_s26 = sld [smem:[#allocation4 + $0x27]] }
  0x46   : > { %3775 = vst [vmem:[#allocation24_spill] sm:$0xff] %v2654_v32  ;;  %2158 = vtanh.f32 %v402_v18  ;;  %v431_v33 = vadd.f32 %v427_v19, %v419_v23  ;;  %v432_v34 = vadd.f32 %v428_v21, %v420_v24  ;;  %v453_v35 = vmul.f32 %v2654_v32, %v2460_v0  ;;  %s2783_s27 = sld [smem:[#allocation4 + $0x2e]] }
  0x47   : > { %v445_v36 = vrot.slane %v441_v29, 1  ;;  %v446_v38 = vrot.slane %v442_v31, 1  ;;  %v454_v40 = vmul.f32 %v2654_v32, %v2462_v1  ;;  %3776 = vst [vmem:[#allocation25_spill] sm:$0xff] %v2665_v41  ;;  %v465_v46 = vmul.f32 %v2665_v41, %v2460_v0  ;;  %s2792_s28 = sld [smem:[#allocation5 + $0x5]] }
  0x48   : > { %v437_v42 = vadd.f32 %v435_v25, %v431_v33  ;;  %v438_v43 = vadd.f32 %v436_v26, %v432_v34  ;;  %v457_v45 = vrot.slane %v453_v35, 2  ;;  %v466_v55 = vmul.f32 %v2665_v41, %v2462_v1 }
  0x49   : > { %v458_v54 = vrot.slane %v454_v40, 2  ;;  %v2674_v58 = vstv %s2627_s29  ;;  %v490_v59 = vstv %s2633_s2  ;;  %v469_v62 = vrot.slane %v465_v46, 3  ;;  %s2800_s29 = sld [smem:[#allocation4 + $0x5]] }
  0x4a   : > { %3777 = vst [vmem:[#allocation26_spill] sm:$0xff] %v2674_v58  ;;  %v449_v60 = vadd.f32 %v445_v36, %v437_v42  ;;  %v450_v61 = vadd.f32 %v446_v38, %v438_v43  ;;  %v477_v8 = vmul.f32 %v2674_v58, %v2460_v0  ;;  %v470_v11 = vrot.slane %v466_v55, 3  ;;  %s2808_s2 = sld [smem:[#allocation4 + $0xc]] }
  0x4b   : > { %v2681_v9 = vpop.eup %2156  ;;  %v478_v12 = vmul.f32 %v2674_v58, %v2462_v1  ;;  %v2686_v13 = vadd.f32 %v490_v59, %v2464_v2  ;;  %v2689_v16 = vadd.f32 %v490_v59, %v2466_v3  ;;  %v2694_v24 = vstv %s2647_s9  ;;  %s2812_s9 = sld [smem:[#allocation4 + $0x13]] }
  0x4c   : > { %v2691_v18 = vpop.eup %2158  ;;  %v461_v19 = vadd.f32 %v457_v45, %v449_v60  ;;  %v462_v21 = vadd.f32 %v458_v54, %v450_v61  ;;  %v481_v23 = vrot.slane %v477_v8, 4  ;;  %3780 = vst [vmem:[#allocation29_spill] sm:$0xff] %v2694_v24  ;;  %v495_v26 = vmul.f32 %v2694_v24, %v2460_v0 }
  0x4d   : > { %3778 = vst [vmem:[#allocation27_spill] sm:$0xff] %v2686_v13  ;;  %v482_v25 = vrot.slane %v478_v12, 4  ;;  %v496_v29 = vmul.f32 %v2694_v24, %v2462_v1  ;;  %v2703_v31 = vstv %s2656_s11  ;;  %v2712_v42 = vstv %s2660_s13  ;;  %s2831_s11 = sld [smem:[#allocation4 + $0x1a]] }
  0x4e   : > { %3779 = vst [vmem:[#allocation28_spill] sm:$0xff] %v2689_v16  ;;  %v473_v33 = vadd.f32 %v469_v62, %v461_v19  ;;  %v474_v34 = vadd.f32 %v470_v11, %v462_v21  ;;  %v507_v35 = vmul.f32 %v2703_v31, %v2460_v0  ;;  %v508_v36 = vmul.f32 %v2703_v31, %v2462_v1  ;;  %s2837_s13 = sld [smem:[#allocation4 + $0x21]] }
  0x4f   : > { %3781 = vst [vmem:[#allocation30_spill] sm:$0xff] %v2703_v31  ;;  %v499_v38 = vrot.slane %v495_v26, 5  ;;  %v500_v40 = vrot.slane %v496_v29, 5  ;;  %v2715_v43 = vstv %s2667_s16  ;;  %v519_v61 = vmul.f32 %v2712_v42, %v2460_v0  ;;  %s2852_s16 = sld [smem:[#allocation4 + $0x28]] }
  0x50   : > { %3782 = vst [vmem:[#allocation31_spill] sm:$0xff] %v2712_v42  ;;  %v485_v45 = vadd.f32 %v481_v23, %v473_v33  ;;  %v486_v46 = vadd.f32 %v482_v25, %v474_v34  ;;  %v511_v54 = vrot.slane %v507_v35, 6  ;;  %v512_v55 = vrot.slane %v508_v36, 6 }
  0x51   : > { %3783 = vst [vmem:[#allocation32_spill] sm:$0xff] %v2715_v43  ;;  %v503_v59 = vadd.f32 %v499_v38, %v2686_v13  ;;  %v504_v60 = vadd.f32 %v500_v40, %v2689_v16  ;;  %v520_v62 = vmul.f32 %v2712_v42, %v2462_v1  ;;  %v531_v8 = vmul.f32 %v2715_v43, %v2460_v0 }
  0x52   : > { %2160 = vtanh.f32 %v485_v45  ;;  %v532_v11 = vmul.f32 %v2715_v43, %v2462_v1  ;;  %v2732_v12 = vstv %s2679_s17  ;;  %v523_v23 = vrot.slane %v519_v61, 7  ;;  %s2861_s17 = sld [smem:[#allocation4 + $0x2f]] }
  0x53   : > { %3784 = vst [vmem:[#allocation33_spill] sm:$0xff] %v2732_v12  ;;  %2162 = vtanh.f32 %v486_v46  ;;  %v515_v19 = vadd.f32 %v511_v54, %v503_v59  ;;  %v516_v21 = vadd.f32 %v512_v55, %v504_v60  ;;  %v524_v25 = vrot.slane %v520_v62, 7 }
  0x54   : > { %v537_v26 = vmul.f32 %v2732_v12, %v2460_v0  ;;  %v538_v29 = vmul.f32 %v2732_v12, %v2462_v1  ;;  %v2743_v33 = vstv %s2696_s18  ;;  %v2750_v38 = vstv %s2705_s19  ;;  %s2870_s18 = sld [smem:[#allocation5 + $0x6]] }
  0x55   : > { %3785 = vst [vmem:[#allocation34_spill] sm:$0xff] %v2743_v33  ;;  %v527_v34 = vadd.f32 %v523_v23, %v515_v19  ;;  %v549_v35 = vmul.f32 %v2743_v33, %v2460_v0  ;;  %v550_v36 = vmul.f32 %v2743_v33, %v2462_v1  ;;  %v528_v40 = vadd.f32 %v524_v25, %v516_v21  ;;  %s2874_s19 = sld [smem:[#allocation4 + $0x6]] }
  0x56   : > { %3786 = vst [vmem:[#allocation35_spill] sm:$0xff] %v2750_v38  ;;  %v541_v45 = vrot.slane %v537_v26, 1  ;;  %v542_v46 = vrot.slane %v538_v29, 1  ;;  %v561_v54 = vmul.f32 %v2750_v38, %v2460_v0  ;;  %v562_v61 = vmul.f32 %v2750_v38, %v2462_v1 }
  0x57   : > { %v533_v55 = vadd.f32 %v531_v8, %v527_v34  ;;  %v553_v59 = vrot.slane %v549_v35, 2  ;;  %v554_v60 = vrot.slane %v550_v36, 2  ;;  %v534_v19 = vadd.f32 %v532_v11, %v528_v40 }
  0x58   : > { %v2760_v62 = vpop.eup %2160  ;;  %v565_v21 = vrot.slane %v561_v54, 3  ;;  %v574_v23 = vstv %s2717_s20  ;;  %v2764_v25 = vstv %s2719_s21  ;;  %v566_v8 = vrot.slane %v562_v61, 3  ;;  %s2886_s20 = sld [smem:[#allocation4 + $0xd]] }
  0x59   : > { %3787 = vst [vmem:[#allocation36_spill] sm:$0xff] %v2764_v25  ;;  %v2766_v26 = vpop.eup %2162  ;;  %v545_v29 = vadd.f32 %v541_v45, %v533_v55  ;;  %v2769_v34 = vadd.f32 %v574_v23, %v2464_v2  ;;  %v2772_v35 = vadd.f32 %v574_v23, %v2466_v3  ;;  %v546_v36 = vadd.f32 %v542_v46, %v534_v19  ;;  %s2890_s21 = sld [smem:[#allocation4 + $0x14]] }
  0x5a   : > { %v579_v11 = vmul.f32 %v2764_v25, %v2460_v0  ;;  %v580_v40 = vmul.f32 %v2764_v25, %v2462_v1  ;;  %v2781_v54 = vstv %s2734_s22  ;;  %v2790_v23 = vstv %s2736_s23  ;;  %s2901_s22 = sld [smem:[#allocation4 + $0x1b]] }
  0x5b   : > { %3788 = vst [vmem:[#allocation37_spill] sm:$0xff] %v2769_v34  ;;  %v557_v45 = vadd.f32 %v553_v59, %v545_v29  ;;  %v591_v55 = vmul.f32 %v2781_v54, %v2460_v0  ;;  %v592_v61 = vmul.f32 %v2781_v54, %v2462_v1  ;;  %v558_v46 = vadd.f32 %v554_v60, %v546_v36  ;;  %s2908_s23 = sld [smem:[#allocation3 + %s2344_s6]] }
  0x5c   : > { %3789 = vst [vmem:[#allocation38_spill] sm:$0xff] %v2772_v35  ;;  %v583_v19 = vrot.slane %v579_v11, 4  ;;  %v584_v25 = vrot.slane %v580_v40, 4  ;;  %v603_v38 = vmul.f32 %v2790_v23, %v2460_v0  ;;  %v604_v12 = vmul.f32 %v2790_v23, %v2462_v1 }
  0x5d   : > { %3790 = vst [vmem:[#allocation39_spill] sm:$0xff] %v2781_v54  ;;  %v569_v33 = vadd.f32 %v565_v21, %v557_v45  ;;  %v595_v59 = vrot.slane %v591_v55, 5  ;;  %v596_v29 = vrot.slane %v592_v61, 5  ;;  %v570_v43 = vadd.f32 %v566_v8, %v558_v46 }
  0x5e   : > { %3791 = vst [vmem:[#allocation40_spill] sm:$0xff] %v2790_v23  ;;  %v587_v54 = vadd.f32 %v583_v19, %v2769_v34  ;;  %v588_v42 = vadd.f32 %v584_v25, %v2772_v35  ;;  %v607_v16 = vrot.slane %v603_v38, 6  ;;  %v608_v60 = vrot.slane %v604_v12, 6 }
  0x5f   : > { %2164 = vtanh.f32 %v569_v33  ;;  %v2803_v36 = vstv %s2754_s24  ;;  %v2806_v11 = vstv %s2758_s25  ;;  %v2821_v40 = vstv %s2774_s26  ;;  %s2926_s24 = sld [smem:[#allocation4 + $0x22]] }
  0x60   : > { %3792 = vst [vmem:[#allocation41_spill] sm:$0xff] %v2803_v36  ;;  %2166 = vtanh.f32 %v570_v43  ;;  %v599_v21 = vadd.f32 %v595_v59, %v587_v54  ;;  %v600_v8 = vadd.f32 %v596_v29, %v588_v42  ;;  %v615_v25 = vmul.f32 %v2803_v36, %v2460_v0  ;;  %s2937_s25 = sld [smem:[#allocation4 + $0x29]] }
  0x61   : > { %3793 = vst [vmem:[#allocation42_spill] sm:$0xff] %v2806_v11  ;;  %v616_v33 = vmul.f32 %v2803_v36, %v2462_v1  ;;  %v627_v12 = vmul.f32 %v2806_v11, %v2460_v0  ;;  %v628_v38 = vmul.f32 %v2806_v11, %v2462_v1  ;;  %v633_v42 = vmul.f32 %v2821_v40, %v2460_v0  ;;  %s2944_s26 = sld [smem:[#allocation4 + $0x30]] }
  0x62   : > { %3794 = vst [vmem:[#allocation43_spill] sm:$0xff] %v2821_v40  ;;  %v611_v43 = vadd.f32 %v607_v16, %v599_v21  ;;  %v612_v45 = vadd.f32 %v608_v60, %v600_v8  ;;  %v619_v54 = vrot.slane %v615_v25, 7  ;;  %v634_v61 = vmul.f32 %v2821_v40, %v2462_v1 }
  0x63   : > { %v620_v55 = vrot.slane %v616_v33, 7  ;;  %v2828_v46 = vstv %s2783_s27  ;;  %v658_v19 = vstv %s2792_s28  ;;  %v637_v29 = vrot.slane %v633_v42, 1  ;;  %s231_s27 = smul.f32 0.1, %s2908_s23 }
  0x64   : > { %3795 = vst [vmem:[#allocation44_spill] sm:$0xff] %v2828_v46  ;;  %v623_v59 = vadd.f32 %v619_v54, %v611_v43  ;;  %v645_v16 = vmul.f32 %v2828_v46, %v2460_v0  ;;  %v646_v60 = vmul.f32 %v2828_v46, %v2462_v1  ;;  %v638_v25 = vrot.slane %v634_v61, 1 }
  0x65   : > { %v2839_v21 = vpop.eup %2164  ;;  %v624_v8 = vadd.f32 %v620_v55, %v612_v45  ;;  %v2842_v33 = vadd.f32 %v658_v19, %v2464_v2  ;;  %v2845_v43 = vadd.f32 %v658_v19, %v2466_v3  ;;  %v2850_v46 = vstv %s2800_s29  ;;  %s232_s28 = ssub.f32 1.0, %s231_s27  ;;  %s206_s29 = sand.u32 1, %s2336_s1  }
  0x66   : > { %v2847_v54 = vpop.eup %2166  ;;  %v629_v42 = vadd.f32 %v627_v12, %v623_v59  ;;  %v649_v40 = vrot.slane %v645_v16, 2  ;;  %v650_v11 = vrot.slane %v646_v60, 2  ;;  %3798 = vst [vmem:[#allocation47_spill] sm:$0xff] %v2850_v46  ;;  %v663_v45 = vmul.f32 %v2850_v46, %v2460_v0 }
  0x67   : > { %3796 = vst [vmem:[#allocation45_spill] sm:$0xff] %v2842_v33  ;;  %v630_v36 = vadd.f32 %v628_v38, %v624_v8  ;;  %v664_v55 = vmul.f32 %v2850_v46, %v2462_v1  ;;  %v2859_v61 = vstv %s2808_s2  ;;  %v2868_v16 = vstv %s2812_s9  ;;  %s2028_s2 = sshll.u32 %s206_s29, 1  ;;  %s2088_s9 = sshll.u32 %s2344_s6, 1 }
  0x68   : > { %3797 = vst [vmem:[#allocation46_spill] sm:$0xff] %v2845_v43  ;;  %v641_v19 = vadd.f32 %v637_v29, %v629_v42  ;;  %v675_v12 = vmul.f32 %v2859_v61, %v2460_v0  ;;  %v676_v59 = vmul.f32 %v2859_v61, %v2462_v1  ;;  %v667_v60 = vrot.slane %v663_v45, 3 }
  0x69   : > { %3799 = vst [vmem:[#allocation48_spill] sm:$0xff] %v2859_v61  ;;  %v642_v38 = vadd.f32 %v638_v25, %v630_v36  ;;  %v668_v8 = vrot.slane %v664_v55, 3  ;;  %v687_v46 = vmul.f32 %v2868_v16, %v2460_v0  ;;  %v688_v61 = vmul.f32 %v2868_v16, %v2462_v1 }
  0x6a   : > { %3800 = vst [vmem:[#allocation49_spill] sm:$0xff] %v2868_v16  ;;  %v653_v29 = vadd.f32 %v649_v40, %v641_v19  ;;  %v679_v42 = vrot.slane %v675_v12, 4  ;;  %v680_v35 = vrot.slane %v676_v59, 4  ;;  %v671_v23 = vadd.f32 %v667_v60, %v2842_v33 }
  0x6b   : > { %v654_v34 = vadd.f32 %v650_v11, %v642_v38  ;;  %v672_v36 = vadd.f32 %v668_v8, %v2845_v43  ;;  %v691_v25 = vrot.slane %v687_v46, 5  ;;  %v692_v45 = vrot.slane %v688_v61, 5 }
  0x6c   : > { %2168 = vtanh.f32 %v653_v29  ;;  %v2881_v55 = vstv %s2831_s11  ;;  %v2884_v13 = vstv %s2837_s13  ;;  %v683_v40 = vadd.f32 %v679_v42, %v671_v23 }
  0x6d   : > { %3801 = vst [vmem:[#allocation50_spill] sm:$0xff] %v2881_v55  ;;  %2170 = vtanh.f32 %v654_v34  ;;  %v684_v19 = vadd.f32 %v680_v35, %v672_v36  ;;  %v699_v11 = vmul.f32 %v2881_v55, %v2460_v0  ;;  %v700_v46 = vmul.f32 %v2881_v55, %v2462_v1 }
  0x6e   : > { %3802 = vst [vmem:[#allocation51_spill] sm:$0xff] %v2884_v13  ;;  %v711_v61 = vmul.f32 %v2884_v13, %v2460_v0  ;;  %v712_v34 = vmul.f32 %v2884_v13, %v2462_v1  ;;  %v2899_v23 = vstv %s2852_s16  ;;  %v695_v35 = vadd.f32 %v691_v25, %v683_v40  ;;  %s1925_s16 = scalar_lea.hbm %s3636_s5, %s2088_s9 }
  0x6f   : > { %3803 = vst [vmem:[#allocation52_spill] sm:$0xff] %v2899_v23  ;;  %v696_v12 = vadd.f32 %v692_v45, %v684_v19  ;;  %v703_v59 = vrot.slane %v699_v11, 6  ;;  %v723_v38 = vmul.f32 %v2899_v23, %v2460_v0  ;;  %v704_v60 = vrot.slane %v700_v46, 6 }
  0x70   : > { %v715_v8 = vrot.slane %v711_v61, 7  ;;  %v716_v29 = vrot.slane %v712_v34, 7  ;;  %v724_v42 = vmul.f32 %v2899_v23, %v2462_v1  ;;  %v2911_v13 = vstv %s2861_s17  ;;  %s208_s17 = scalar_lea.vmem [#allocation6], %s2028_s2 }
  0x71   : > { %v707_v36 = vadd.f32 %v703_v59, %v695_v35  ;;  %3804 = vst [vmem:[#allocation53_spill] sm:$0xff] %v2911_v13  ;;  %v742_v55 = vstv %s2870_s18  ;;  %v2915_v43 = vstv %s2874_s19  ;;  %v708_v45 = vadd.f32 %v704_v60, %v696_v12  ;;  %s1927_s18 = sshll.u32 %s208_s17, 4  ;;  %s1929_s19 = sshll.u32 %s1925_s16, 4  ;;  %s1928_s18 = int_to_ptr.vmem [resolvable:$true] %s1927_s18  ;;  %s1930_s19 = int_to_ptr.hbm [resolvable:$true] %s1929_s19 }
  0x72   : > { %3805 = vst [vmem:[#allocation54_spill] sm:$0xff] %v2915_v43  ;;  %v2917_v25 = vpop.eup %2168  ;;  %v729_v40 = vmul.f32 %v2911_v13, %v2460_v0  ;;  %v730_v19 = vmul.f32 %v2911_v13, %v2462_v1  ;;  %v2924_v11 = vadd.f32 %v742_v55, %v2464_v2  ;;  %v2931_v34 = vadd.f32 %v742_v55, %v2466_v3  ;;  %s2286_s6 = sshra.s32 %s1930_s19, 4  ;;  %s2287_s6 = int_to_ptr.hbm [resolvable:$true] %s2286_s6 }
  0x73   : > { %v2928_v46 = vpop.eup %2170  ;;  %v719_v61 = vadd.f32 %v715_v8, %v707_v36  ;;  %v747_v35 = vmul.f32 %v2915_v43, %v2460_v0  ;;  %v748_v12 = vmul.f32 %v2915_v43, %v2462_v1  ;;  %v720_v2 = vadd.f32 %v716_v29, %v708_v45  ;;  %p2293_p1 = scmp.lt.s32.totalorder %s2287_s6, %s3636_s5 }
  0x74   : > { %3806 = vst [vmem:[#allocation55_spill] sm:$0xff] %v2924_v11  ;;  %v733_v59 = vrot.slane %v729_v40, 1  ;;  %v734_v60 = vrot.slane %v730_v19, 1  ;;  %v2940_v13 = vstv %s2886_s20  ;;  %v2949_v16 = vstv %s2890_s21  ;;  %s1913_s20 = scalar_lea.sflag [#allocation7], %s206_s29  ;;  %s2288_s21 = scalar_lea.hbm %s2287_s6, 2 }
  0x75   : > { %3807 = vst [vmem:[#allocation56_spill] sm:$0xff] %v2931_v34  ;;  %v725_v23 = vadd.f32 %v723_v38, %v719_v61  ;;  %v751_v8 = vrot.slane %v747_v35, 2  ;;  %v752_v36 = vrot.slane %v748_v12, 2  ;;  %v759_v3 = vmul.f32 %v2940_v13, %v2460_v0  ;;  %p2289_p12 = scmp.ne.s32.totalorder %s2287_s6, %s2288_s21 }
  0x76   : > { %3808 = vst [vmem:[#allocation57_spill] sm:$0xff] %v2940_v13  ;;  %v726_v55 = vadd.f32 %v724_v42, %v720_v2  ;;  %v760_v43 = vmul.f32 %v2940_v13, %v2462_v1  ;;  %v2952_v29 = vstv %s2901_s22  ;;  %v771_v42 = vmul.f32 %v2949_v16, %v2460_v0 }
  0x77   : > { %3809 = vst [vmem:[#allocation58_spill] sm:$0xff] %v2949_v16  ;;  %v737_v45 = vadd.f32 %v733_v59, %v725_v23  ;;  %v755_v40 = vadd.f32 %v751_v8, %v2924_v11  ;;  %v756_v38 = vadd.f32 %v752_v36, %v2931_v34  ;;  %v763_v19 = vrot.slane %v759_v3, 3  ;;  %p2290_p13 = pnand %p2289_p12, %p2437_p4 }
  0x78   : > { %3810 = vst [vmem:[#allocation59_spill] sm:$0xff] %v2952_v29  ;;  %v738_v61 = vadd.f32 %v734_v60, %v726_v55  ;;  %v764_v35 = vrot.slane %v760_v43, 3  ;;  %v772_v12 = vmul.f32 %v2949_v16, %v2462_v1  ;;  %v783_v23 = vmul.f32 %v2952_v29, %v2460_v0 }
  0x79   : > { %2172 = vtanh.f32 %v737_v45  ;;  %v767_v2 = vadd.f32 %v763_v19, %v755_v40  ;;  %v784_v59 = vmul.f32 %v2952_v29, %v2462_v1  ;;  %v775_v8 = vrot.slane %v771_v42, 4  ;;  %p2291_p0 = pneg %p2290_p13 }
  0x7a   : > { %2174 = vtanh.f32 %v738_v61  ;;  %v768_v60 = vadd.f32 %v764_v35, %v756_v38  ;;  %v776_v43 = vrot.slane %v772_v12, 4  ;;  %v787_v36 = vrot.slane %v783_v23, 5 }
  0x7b   : > { %v788_v3 = vrot.slane %v784_v59, 5  ;;  %v2966_v55 = vstv %s2926_s24  ;;  %v2969_v34 = vstv %s2937_s25  ;;  %v779_v11 = vadd.f32 %v775_v8, %v767_v2  ;;  %s2292_s24 = scalar_lea.hbm %s3636_s5, 4 }
  0x7c   : > { %3811 = vst [vmem:[#allocation60_spill] sm:$0xff] %v2966_v55  ;;  %v780_v45 = vadd.f32 %v776_v43, %v768_v60  ;;  %v795_v40 = vmul.f32 %v2966_v55, %v2460_v0  ;;  %v796_v19 = vmul.f32 %v2966_v55, %v2462_v1  ;;  %v807_v38 = vmul.f32 %v2969_v34, %v2460_v0  ;;  %p2294_p2 = scmp.lt.s32.totalorder %s2292_s24, %s2288_s21 }
  0x7d   : > { %3812 = vst [vmem:[#allocation61_spill] sm:$0xff] %v2969_v34  ;;  %v808_v61 = vmul.f32 %v2969_v34, %v2462_v1  ;;  %v2980_v35 = vstv %s2944_s26  ;;  %v2982_v42 = vstv %s231_s27  ;;  %v791_v12 = vadd.f32 %v787_v36, %v779_v11 }
  0x7e   : > { %v792_v2 = vadd.f32 %v788_v3, %v780_v45  ;;  %v799_v23 = vrot.slane %v795_v40, 6  ;;  %v800_v59 = vrot.slane %v796_v19, 6  ;;  %v811_v8 = vrot.slane %v807_v38, 7  ;;  %p2295_p3 = por %p2294_p2, %p2293_p1 }
  0x7f   : > { %v2173_v60 = vpop.eup %2172  ;;  %v812_v43 = vrot.slane %v808_v61, 7  ;;  %v819_v55 = vmul.f32 %v2980_v35, %v2460_v0  ;;  %v820_v29 = vmul.f32 %v2980_v35, %v2462_v1  ;;  %v826_v33 = vmul.f32 %v2982_v42, %v2460_v0 }
  0x80   : > { %v2175_v16 = vpop.eup %2174  ;;  %v803_v13 = vadd.f32 %v799_v23, %v791_v12  ;;  %v804_v34 = vadd.f32 %v800_v59, %v792_v2  ;;  %v827_v11 = vmul.f32 %v2982_v42, %v2462_v1  ;;  %v2992_v36 = vstv %s232_s28  ;;  %p2296_p5 = pnand %p2295_p3, %p2291_p0 }
  0x81   : > { %v829_v40 = vmul.f32 %v2601_v44, %v2992_v36  ;;  %v830_v19 = vmul.f32 %v2613_v53, %v2992_v36  ;;  %v833_v38 = vmul.f32 %v2681_v9, %v2992_v36  ;;  %v834_v61 = vmul.f32 %v2691_v18, %v2992_v36 }
  0x82   : > { %v815_v3 = vadd.f32 %v811_v8, %v803_v13  ;;  %v816_v45 = vadd.f32 %v812_v43, %v804_v34  ;;  %v837_v0 = vmul.f32 %v2760_v62, %v2992_v36  ;;  %v838_v1 = vmul.f32 %v2766_v26, %v2992_v36 }
  0x83   : > { %v3006_v12 = vadd.f32 %v829_v40, %v826_v33  ;;  %v3008_v44 = vadd.f32 %v830_v19, %v827_v11  ;;  %v3010_v2 = vadd.f32 %v833_v38, %v826_v33  ;;  %v3012_v53 = vadd.f32 %v834_v61, %v827_v11 }
  0x84   : > { %v821_v13 = vadd.f32 %v819_v55, %v815_v3  ;;  %v822_v34 = vadd.f32 %v820_v29, %v816_v45  ;;  %v3014_v9 = vadd.f32 %v837_v0, %v826_v33  ;;  %v3016_v23 = vadd.f32 %v838_v1, %v827_v11 }
  0x85   : > { %v841_v18 = vmul.f32 %v2839_v21, %v2992_v36  ;;  %v842_v62 = vmul.f32 %v2847_v54, %v2992_v36  ;;  %v845_v26 = vmul.f32 %v2917_v25, %v2992_v36  ;;  %v846_v29 = vmul.f32 %v2928_v46, %v2992_v36 }
  0x86   : > { %2176 = vtanh.f32 %v821_v13  ;;  %v849_v55 = vmul.f32 %v2173_v60, %v2992_v36  ;;  %v850_v59 = vmul.f32 %v2175_v16, %v2992_v36  ;;  %v857_v21 = vmul.f32 %v3006_v12, %v2474_v7 }
  0x87   : > { %2178 = vtanh.f32 %v822_v34  ;;  %v3028_v8 = vadd.f32 %v841_v18, %v826_v33  ;;  %v3030_v43 = vadd.f32 %v842_v62, %v827_v11  ;;  %v3032_v3 = vadd.f32 %v845_v26, %v826_v33 }
  0x88   : > { %v3036_v54 = vadd.f32 %v846_v29, %v827_v11  ;;  %v3038_v25 = vadd.f32 %v849_v55, %v826_v33  ;;  %v3040_v45 = vadd.f32 %v850_v59, %v827_v11  ;;  %v858_v46 = vmul.f32 %v3008_v44, %v2474_v7 }
  0x89   : > { %v859_v16 = vadd.f32 %v857_v21, %v2469_v5  ;;  %v861_v60 = vmul.f32 %v3010_v2, %v2480_v10  ;;  %v862_v40 = vmul.f32 %v3012_v53, %v2480_v10  ;;  %v871_v19 = vmul.f32 %v3014_v9, %v2488_v17 }
  0x8a   : > { %v860_v38 = vadd.f32 %v858_v46, %v2472_v6  ;;  %v872_v61 = vmul.f32 %v3016_v23, %v2488_v17  ;;  %v881_v0 = vmul.f32 %v3028_v8, %v2498_v22  ;;  %v882_v1 = vmul.f32 %v3030_v43, %v2498_v22 }
  0x8b   : > { %v865_v34 = vrot.slane %v861_v60, 1  ;;  %v866_v18 = vrot.slane %v862_v40, 1  ;;  %v875_v62 = vrot.slane %v871_v19, 2  ;;  %v891_v26 = vmul.f32 %v3032_v3, %v2506_v27 }
  0x8c   : > { %v2177_v13 = vpop.eup %2176  ;;  %v876_v59 = vrot.slane %v872_v61, 2  ;;  %v885_v21 = vrot.slane %v881_v0, 3  ;;  %v886_v46 = vrot.slane %v882_v1, 3  ;;  %v892_v22 = vmul.f32 %v3036_v54, %v2506_v27 }
  0x8d   : > { %v2179_v29 = vpop.eup %2178  ;;  %v853_v55 = vmul.f32 %v2177_v13, %v2992_v36  ;;  %v869_v5 = vadd.f32 %v865_v34, %v859_v16  ;;  %v870_v17 = vadd.f32 %v866_v18, %v860_v38  ;;  %v895_v60 = vrot.slane %v891_v26, 4 }
  0x8e   : > { %v854_v6 = vmul.f32 %v2179_v29, %v2992_v36  ;;  %v901_v40 = vmul.f32 %v3038_v25, %v2508_v28  ;;  %v902_v19 = vmul.f32 %v3040_v45, %v2508_v28  ;;  %v896_v1 = vrot.slane %v892_v22, 4 }
  0x8f   : > { %v3064_v10 = vadd.f32 %v853_v55, %v826_v33  ;;  %v879_v61 = vadd.f32 %v875_v62, %v869_v5  ;;  %v880_v0 = vadd.f32 %v876_v59, %v870_v17  ;;  %v923_v33 = vmul.f32 %v3006_v12, %v2538_v51 }
  0x90   : > { %v3070_v13 = vadd.f32 %v854_v6, %v827_v11  ;;  %v905_v29 = vrot.slane %v901_v40, 5  ;;  %v906_v16 = vrot.slane %v902_v19, 5  ;;  %v924_v6 = vmul.f32 %v3008_v44, %v2538_v51 }
  0x91   : > { %v911_v38 = vmul.f32 %v3064_v10, %v2522_v39  ;;  %v889_v34 = vadd.f32 %v885_v21, %v879_v61  ;;  %v890_v18 = vadd.f32 %v886_v46, %v880_v0  ;;  %v927_v5 = vrot.slane %v923_v33, 7 }
  0x92   : > { %v912_v26 = vmul.f32 %v3070_v13, %v2522_v39  ;;  %v933_v17 = vmul.f32 %v3010_v2, %v2541_v52  ;;  %v934_v22 = vmul.f32 %v3012_v53, %v2541_v52  ;;  %v928_v40 = vrot.slane %v924_v6, 7 }
  0x93   : > { %v915_v11 = vrot.slane %v911_v38, 6  ;;  %v899_v62 = vadd.f32 %v895_v60, %v889_v34  ;;  %v900_v55 = vadd.f32 %v896_v1, %v890_v18  ;;  %v931_v21 = vadd.f32 %v927_v5, %v2532_v47 }
  0x94   : > { %v916_v59 = vrot.slane %v912_v26, 6  ;;  %v937_v46 = vmul.f32 %v3014_v9, %v2558_v63  ;;  %v938_v19 = vmul.f32 %v3016_v23, %v2558_v63  ;;  %v947_v61 = vmul.f32 %v3028_v8, %v2561_v4 }
  0x95   : > { %v909_v0 = vadd.f32 %v905_v29, %v899_v62  ;;  %v910_v38 = vadd.f32 %v906_v16, %v900_v55  ;;  %v932_v33 = vadd.f32 %v928_v40, %v2535_v48  ;;  %v948_v60 = vmul.f32 %v3030_v43, %v2561_v4 }
  0x96   : > { %v935_v1 = vadd.f32 %v933_v17, %v931_v21  ;;  %v941_v34 = vrot.slane %v937_v46, 1  ;;  %v942_v18 = vrot.slane %v938_v19, 1  ;;  %v951_v26 = vrot.slane %v947_v61, 2 }
  0x97   : > { %v919_v6 = vadd.f32 %v915_v11, %v909_v0  ;;  %v920_v5 = vadd.f32 %v916_v59, %v910_v38  ;;  %v936_v47 = vadd.f32 %v934_v22, %v932_v33  ;;  %v952_v52 = vrot.slane %v948_v60, 2 }
  0x98   : > { %v945_v51 = vadd.f32 %v941_v34, %v935_v1  ;;  %v957_v63 = vmul.f32 %v3032_v3, %v2578_v20  ;;  %v958_v29 = vmul.f32 %v3036_v54, %v2578_v20  ;;  %v967_v16 = vmul.f32 %v3038_v25, %v2587_v30 }
  0x99   : > { %2180 = vtanh.f32 %v919_v6  ;;  %v946_v62 = vadd.f32 %v942_v18, %v936_v47  ;;  %v968_v17 = vmul.f32 %v3040_v45, %v2587_v30  ;;  %v977_v11 = vmul.f32 %v3064_v10, %v2596_v37 }
  0x9a   : > { %2182 = vtanh.f32 %v920_v5  ;;  %v955_v22 = vadd.f32 %v951_v26, %v945_v51  ;;  %v961_v55 = vrot.slane %v957_v63, 3  ;;  %v962_v59 = vrot.slane %v958_v29, 3 }
  0x9b   : > { %v956_v40 = vadd.f32 %v952_v52, %v946_v62  ;;  %v971_v21 = vrot.slane %v967_v16, 4  ;;  %v972_v46 = vrot.slane %v968_v17, 4  ;;  %v978_v19 = vmul.f32 %v3070_v13, %v2596_v37 }
  0x9c   : > { %v965_v61 = vadd.f32 %v961_v55, %v955_v22  ;;  %v981_v0 = vrot.slane %v977_v11, 5  ;;  %v989_v47 = vmul.f32 %v3006_v12, %v2616_v56  ;;  %v990_v38 = vmul.f32 %v3008_v44, %v2616_v56 }
  0x9d   : > { %v966_v33 = vadd.f32 %v962_v59, %v956_v40  ;;  %v982_v60 = vrot.slane %v978_v19, 5  ;;  %v999_v51 = vmul.f32 %v3010_v2, %v2619_v57  ;;  %v1000_v52 = vmul.f32 %v3012_v53, %v2619_v57  ;;  %v3835_v57 = vld [vmem:[#allocation51_spill] sm:$0xff] }
  0x9e   : > { %v975_v63 = vadd.f32 %v971_v21, %v965_v61  ;;  %v993_v1 = vrot.slane %v989_v47, 6  ;;  %v994_v34 = vrot.slane %v990_v38, 6  ;;  %v1009_v18 = vmul.f32 %v3014_v9, %v2636_v14 }
  0x9f   : > { %v3116_v26 = vpop.eup %2180  ;;  %v976_v6 = vadd.f32 %v972_v46, %v966_v33  ;;  %v1003_v5 = vrot.slane %v999_v51, 7  ;;  %v1004_v29 = vrot.slane %v1000_v52, 7  ;;  %v1010_v16 = vmul.f32 %v3016_v23, %v2636_v14 }
  0xa0   : > { %v3120_v62 = vpop.eup %2182  ;;  %v985_v17 = vadd.f32 %v981_v0, %v975_v63  ;;  %v997_v11 = vadd.f32 %v993_v1, %v2608_v49  ;;  %v998_v22 = vadd.f32 %v994_v34, %v2611_v50  ;;  %v1013_v55 = vmul.f32 %v3028_v8, %v2639_v15 }
  0xa1   : > { %v986_v59 = vadd.f32 %v982_v60, %v976_v6  ;;  %v1014_v40 = vmul.f32 %v3030_v43, %v2639_v15  ;;  %v1023_v21 = vmul.f32 %v3032_v3, %v2654_v32  ;;  %v1024_v46 = vmul.f32 %v3036_v54, %v2654_v32  ;;  %v3834_v15 = vld [vmem:[#allocation50_spill] sm:$0xff] }
  0xa2   : > { %2184 = vtanh.f32 %v985_v17  ;;  %v1007_v19 = vadd.f32 %v1003_v5, %v997_v11  ;;  %v1008_v61 = vadd.f32 %v1004_v29, %v998_v22  ;;  %v1017_v0 = vrot.slane %v1013_v55, 1 }
  0xa3   : > { %2186 = vtanh.f32 %v986_v59  ;;  %v1018_v47 = vrot.slane %v1014_v40, 1  ;;  %v1027_v38 = vrot.slane %v1023_v21, 2  ;;  %v1028_v33 = vrot.slane %v1024_v46, 2 }
  0xa4   : > { %v1011_v51 = vadd.f32 %v1009_v18, %v1007_v19  ;;  %v1012_v52 = vadd.f32 %v1010_v16, %v1008_v61  ;;  %v1033_v60 = vmul.f32 %v3038_v25, %v2665_v41  ;;  %v1034_v63 = vmul.f32 %v3040_v45, %v2665_v41  ;;  %v3817_v41 = vld [vmem:[#allocation33_spill] sm:$0xff] }
  0xa5   : > { %v1043_v1 = vmul.f32 %v3064_v10, %v2674_v58  ;;  %v1044_v34 = vmul.f32 %v3070_v13, %v2674_v58  ;;  %v1055_v6 = vmul.f32 %v3006_v12, %v2694_v24  ;;  %v1056_v5 = vmul.f32 %v3008_v44, %v2694_v24 }
  0xa6   : > { %v1021_v18 = vadd.f32 %v1017_v0, %v1011_v51  ;;  %v1022_v29 = vadd.f32 %v1018_v47, %v1012_v52  ;;  %v1037_v16 = vrot.slane %v1033_v60, 3  ;;  %v1038_v17 = vrot.slane %v1034_v63, 3  ;;  %v3813_v0 = vld [vmem:[#allocation27_spill] sm:$0xff]  ;;  %v3814_v51 = vld [vmem:[#allocation28_spill] sm:$0xff] }
  0xa7   : > { %v1047_v11 = vrot.slane %v1043_v1, 4  ;;  %v1048_v22 = vrot.slane %v1044_v34, 4  ;;  %v1059_v55 = vrot.slane %v1055_v6, 5  ;;  %v1060_v59 = vrot.slane %v1056_v5, 5  ;;  %v3815_v60 = vld [vmem:[#allocation31_spill] sm:$0xff] }
  0xa8   : > { %v3144_v40 = vpop.eup %2184  ;;  %v1031_v21 = vadd.f32 %v1027_v38, %v1021_v18  ;;  %v1032_v46 = vadd.f32 %v1028_v33, %v1022_v29  ;;  %v1065_v19 = vmul.f32 %v3010_v2, %v2703_v31  ;;  %v1066_v61 = vmul.f32 %v3012_v53, %v2703_v31  ;;  %v3816_v29 = vld [vmem:[#allocation32_spill] sm:$0xff] }
  0xa9   : > { %v3150_v58 = vpop.eup %2186  ;;  %v1063_v47 = vadd.f32 %v1059_v55, %v3813_v0  ;;  %v1064_v52 = vadd.f32 %v1060_v59, %v3814_v51  ;;  %v1075_v63 = vmul.f32 %v3014_v9, %v3815_v60  ;;  %v1076_v1 = vmul.f32 %v3016_v23, %v3815_v60 }
  0xaa   : > { %v1041_v38 = vadd.f32 %v1037_v16, %v1031_v21  ;;  %v1042_v33 = vadd.f32 %v1038_v17, %v1032_v46  ;;  %v1069_v34 = vrot.slane %v1065_v19, 6  ;;  %v1070_v6 = vrot.slane %v1066_v61, 6  ;;  %v3818_v17 = vld [vmem:[#allocation34_spill] sm:$0xff] }
  0xab   : > { %v1079_v5 = vrot.slane %v1075_v63, 7  ;;  %v1080_v18 = vrot.slane %v1076_v1, 7  ;;  %v1085_v31 = vmul.f32 %v3028_v8, %v3816_v29  ;;  %v1086_v55 = vmul.f32 %v3030_v43, %v3816_v29  ;;  %v3819_v63 = vld [vmem:[#allocation35_spill] sm:$0xff] }
  0xac   : > { %v1051_v0 = vadd.f32 %v1047_v11, %v1041_v38  ;;  %v1052_v59 = vadd.f32 %v1048_v22, %v1042_v33  ;;  %v1073_v51 = vadd.f32 %v1069_v34, %v1063_v47  ;;  %v1074_v24 = vadd.f32 %v1070_v6, %v1064_v52 }
  0xad   : > { %v1089_v32 = vmul.f32 %v3032_v3, %v3817_v41  ;;  %v1090_v16 = vmul.f32 %v3036_v54, %v3817_v41  ;;  %v1099_v21 = vmul.f32 %v3038_v25, %v3818_v17  ;;  %v1100_v46 = vmul.f32 %v3040_v45, %v3818_v17  ;;  %v3820_v41 = vld [vmem:[#allocation36_spill] sm:$0xff] }
  0xae   : > { %2188 = vtanh.f32 %v1051_v0  ;;  %v1083_v19 = vadd.f32 %v1079_v5, %v1073_v51  ;;  %v1084_v61 = vadd.f32 %v1080_v18, %v1074_v24  ;;  %v1109_v11 = vmul.f32 %v3064_v10, %v3819_v63  ;;  %v3821_v0 = vld [vmem:[#allocation39_spill] sm:$0xff] }
  0xaf   : > { %2190 = vtanh.f32 %v1052_v59  ;;  %v1093_v22 = vrot.slane %v1089_v32, 1  ;;  %v1094_v47 = vrot.slane %v1090_v16, 1  ;;  %v1103_v52 = vrot.slane %v1099_v21, 2  ;;  %v3822_v21 = vld [vmem:[#allocation40_spill] sm:$0xff] }
  0xb0   : > { %v1087_v1 = vadd.f32 %v1085_v31, %v1083_v19  ;;  %v1088_v38 = vadd.f32 %v1086_v55, %v1084_v61  ;;  %v1104_v33 = vrot.slane %v1100_v46, 2  ;;  %v1110_v34 = vmul.f32 %v3070_v13, %v3819_v63 }
  0xb1   : > { %v1113_v6 = vrot.slane %v1109_v11, 3  ;;  %v1121_v17 = vmul.f32 %v3006_v12, %v3820_v41  ;;  %v1122_v24 = vmul.f32 %v3008_v44, %v3820_v41  ;;  %v1131_v51 = vmul.f32 %v3010_v2, %v3821_v0 }
  0xb2   : > { %v1097_v5 = vadd.f32 %v1093_v22, %v1087_v1  ;;  %v1098_v32 = vadd.f32 %v1094_v47, %v1088_v38  ;;  %v1114_v18 = vrot.slane %v1110_v34, 3  ;;  %v1132_v31 = vmul.f32 %v3012_v53, %v3821_v0  ;;  %v3823_v47 = vld [vmem:[#allocation37_spill] sm:$0xff]  ;;  %v3824_v38 = vld [vmem:[#allocation38_spill] sm:$0xff] }
  0xb3   : > { %v1125_v55 = vrot.slane %v1121_v17, 4  ;;  %v1126_v59 = vrot.slane %v1122_v24, 4  ;;  %v1135_v16 = vrot.slane %v1131_v51, 5  ;;  %v1141_v46 = vmul.f32 %v3014_v9, %v3822_v21  ;;  %v3825_v24 = vld [vmem:[#allocation41_spill] sm:$0xff] }
  0xb4   : > { %v3184_v19 = vpop.eup %2188  ;;  %v1107_v61 = vadd.f32 %v1103_v52, %v1097_v5  ;;  %v1108_v11 = vadd.f32 %v1104_v33, %v1098_v32  ;;  %v1136_v41 = vrot.slane %v1132_v31, 5  ;;  %v1142_v63 = vmul.f32 %v3016_v23, %v3822_v21  ;;  %v3826_v31 = vld [vmem:[#allocation42_spill] sm:$0xff] }
  0xb5   : > { %v3188_v22 = vpop.eup %2190  ;;  %v1129_v1 = vadd.f32 %v1125_v55, %v3823_v47  ;;  %v1130_v34 = vadd.f32 %v1126_v59, %v3824_v38  ;;  %v1145_v17 = vrot.slane %v1141_v46, 6  ;;  %v1151_v51 = vmul.f32 %v3028_v8, %v3825_v24  ;;  %v3827_v46 = vld [vmem:[#allocation43_spill] sm:$0xff] }
  0xb6   : > { %v1117_v0 = vadd.f32 %v1113_v6, %v1107_v61  ;;  %v1118_v29 = vadd.f32 %v1114_v18, %v1108_v11  ;;  %v1146_v60 = vrot.slane %v1142_v63, 6  ;;  %v1152_v52 = vmul.f32 %v3030_v43, %v3825_v24  ;;  %v3829_v11 = vld [vmem:[#allocation47_spill] sm:$0xff] }
  0xb7   : > { %v1139_v33 = vadd.f32 %v1135_v16, %v1129_v1  ;;  %v1140_v5 = vadd.f32 %v1136_v41, %v1130_v34  ;;  %v1155_v32 = vrot.slane %v1151_v51, 7  ;;  %v1161_v21 = vmul.f32 %v3032_v3, %v3826_v31  ;;  %v3828_v41 = vld [vmem:[#allocation44_spill] sm:$0xff] }
  0xb8   : > { %2192 = vtanh.f32 %v1117_v0  ;;  %v1156_v55 = vrot.slane %v1152_v52, 7  ;;  %v1162_v59 = vmul.f32 %v3036_v54, %v3826_v31  ;;  %v1165_v38 = vmul.f32 %v3038_v25, %v3827_v46 }
  0xb9   : > { %2194 = vtanh.f32 %v1118_v29  ;;  %v1149_v6 = vadd.f32 %v1145_v17, %v1139_v33  ;;  %v1150_v63 = vadd.f32 %v1146_v60, %v1140_v5  ;;  %v1166_v18 = vmul.f32 %v3040_v45, %v3827_v46  ;;  %v3830_v5 = vld [vmem:[#allocation48_spill] sm:$0xff] }
  0xba   : > { %v1169_v16 = vrot.slane %v1165_v38, 1  ;;  %v1175_v61 = vmul.f32 %v3064_v10, %v3828_v41  ;;  %v1176_v0 = vmul.f32 %v3070_v13, %v3828_v41  ;;  %v1187_v1 = vmul.f32 %v3006_v12, %v3829_v11 }
  0xbb   : > { %v1159_v34 = vadd.f32 %v1155_v32, %v1149_v6  ;;  %v1160_v51 = vadd.f32 %v1156_v55, %v1150_v63  ;;  %v1170_v52 = vrot.slane %v1166_v18, 1  ;;  %v1188_v29 = vmul.f32 %v3008_v44, %v3829_v11  ;;  %v3831_v32 = vld [vmem:[#allocation45_spill] sm:$0xff] }
  0xbc   : > { %v1179_v60 = vrot.slane %v1175_v61, 2  ;;  %v1180_v17 = vrot.slane %v1176_v0, 2  ;;  %v1191_v33 = vrot.slane %v1187_v1, 3  ;;  %v1197_v38 = vmul.f32 %v3010_v2, %v3830_v5  ;;  %v3832_v63 = vld [vmem:[#allocation49_spill] sm:$0xff] }
  0xbd   : > { %v1163_v46 = vadd.f32 %v1161_v21, %v1159_v34  ;;  %v1164_v31 = vadd.f32 %v1162_v59, %v1160_v51  ;;  %v1192_v24 = vrot.slane %v1188_v29, 3  ;;  %v1198_v41 = vmul.f32 %v3012_v53, %v3830_v5  ;;  %v3833_v59 = vld [vmem:[#allocation46_spill] sm:$0xff] }
  0xbe   : > { %v3216_v47 = vpop.eup %2192  ;;  %v1195_v55 = vadd.f32 %v1191_v33, %v3831_v32  ;;  %v1201_v6 = vrot.slane %v1197_v38, 4  ;;  %v1207_v18 = vmul.f32 %v3014_v9, %v3832_v63  ;;  %v1208_v61 = vmul.f32 %v3016_v23, %v3832_v63 }
  0xbf   : > { %v3223_v0 = vpop.eup %2194  ;;  %v1173_v1 = vadd.f32 %v1169_v16, %v1163_v46  ;;  %v1174_v21 = vadd.f32 %v1170_v52, %v1164_v31  ;;  %v1196_v34 = vadd.f32 %v1192_v24, %v3833_v59  ;;  %v1202_v51 = vrot.slane %v1198_v41, 4  ;;  %v3836_v41 = vld [vmem:[#allocation52_spill] sm:$0xff] }
  0xc0   : > { %v1205_v29 = vadd.f32 %v1201_v6, %v1195_v55  ;;  %v1211_v5 = vrot.slane %v1207_v18, 5  ;;  %v1212_v11 = vrot.slane %v1208_v61, 5  ;;  %v1217_v33 = vmul.f32 %v3028_v8, %v3834_v15  ;;  %v3837_v18 = vld [vmem:[#allocation53_spill] sm:$0xff] }
  0xc1   : > { %v1183_v38 = vadd.f32 %v1179_v60, %v1173_v1  ;;  %v1184_v32 = vadd.f32 %v1180_v17, %v1174_v21  ;;  %v1206_v50 = vadd.f32 %v1202_v51, %v1196_v34  ;;  %v1218_v49 = vmul.f32 %v3030_v43, %v3834_v15 }
  0xc2   : > { %v1215_v63 = vadd.f32 %v1211_v5, %v1205_v29  ;;  %v1221_v14 = vrot.slane %v1217_v33, 6  ;;  %v1227_v31 = vmul.f32 %v3032_v3, %v3835_v57  ;;  %v1228_v24 = vmul.f32 %v3036_v54, %v3835_v57 }
  0xc3   : > { %2196 = vtanh.f32 %v1183_v38  ;;  %v1216_v46 = vadd.f32 %v1212_v11, %v1206_v50  ;;  %v1222_v16 = vrot.slane %v1218_v49, 6  ;;  %v1237_v52 = vmul.f32 %v3038_v25, %v3836_v41  ;;  %v3838_v50 = vld [vmem:[#allocation54_spill] sm:$0xff] }
  0xc4   : > { %2198 = vtanh.f32 %v1184_v32  ;;  %v1225_v60 = vadd.f32 %v1221_v14, %v1215_v63  ;;  %v1231_v17 = vrot.slane %v1227_v31, 7  ;;  %v1232_v55 = vrot.slane %v1228_v24, 7  ;;  %v3839_v14 = vld [vmem:[#allocation57_spill] sm:$0xff] }
  0xc5   : > { %v1226_v6 = vadd.f32 %v1222_v16, %v1216_v46  ;;  %v1238_v5 = vmul.f32 %v3040_v45, %v3836_v41  ;;  %v1241_v61 = vmul.f32 %v3064_v10, %v3837_v18  ;;  %v1242_v1 = vmul.f32 %v3070_v13, %v3837_v18 }
  0xc6   : > { %v1235_v21 = vadd.f32 %v1231_v17, %v1225_v60  ;;  %v1253_v49 = vmul.f32 %v3006_v12, %v3838_v50  ;;  %v1254_v11 = vmul.f32 %v3008_v44, %v3838_v50  ;;  %v1263_v32 = vmul.f32 %v3010_v2, %v3839_v14  ;;  %v3840_v17 = vld [vmem:[#allocation58_spill] sm:$0xff] }
  0xc7   : > { %v1236_v63 = vadd.f32 %v1232_v55, %v1226_v6  ;;  %v1245_v34 = vrot.slane %v1241_v61, 1  ;;  %v1246_v51 = vrot.slane %v1242_v1, 1  ;;  %v1264_v29 = vmul.f32 %v3012_v53, %v3839_v14  ;;  %v3841_v61 = vld [vmem:[#allocation55_spill] sm:$0xff]  ;;  %v3842_v14 = vld [vmem:[#allocation56_spill] sm:$0xff] }
  0xc8   : > { %v1239_v33 = vadd.f32 %v1237_v52, %v1235_v21  ;;  %v1257_v38 = vrot.slane %v1253_v49, 2  ;;  %v1258_v31 = vrot.slane %v1254_v11, 2  ;;  %v1267_v24 = vrot.slane %v1263_v32, 3  ;;  %v3843_v21 = vld [vmem:[#allocation59_spill] sm:$0xff] }
  0xc9   : > { %v3250_v46 = vpop.eup %2196  ;;  %v1240_v16 = vadd.f32 %v1238_v5, %v1236_v63  ;;  %v1268_v60 = vrot.slane %v1264_v29, 3  ;;  %v1273_v18 = vmul.f32 %v3014_v9, %v3840_v17  ;;  %v1274_v50 = vmul.f32 %v3016_v23, %v3840_v17 }
  0xca   : > { %v3256_v55 = vpop.eup %2198  ;;  %v1249_v6 = vadd.f32 %v1245_v34, %v1239_v33  ;;  %v1261_v1 = vadd.f32 %v1257_v38, %v3841_v61  ;;  %v1262_v52 = vadd.f32 %v1258_v31, %v3842_v14  ;;  %v1283_v49 = vmul.f32 %v3028_v8, %v3843_v21  ;;  %v3844_v34 = vld [vmem:[#allocation60_spill] sm:$0xff] }
  0xcb   : > { %v1250_v11 = vadd.f32 %v1246_v51, %v1240_v16  ;;  %v1277_v32 = vrot.slane %v1273_v18, 4  ;;  %v1278_v5 = vrot.slane %v1274_v50, 4  ;;  %v1284_v63 = vmul.f32 %v3030_v43, %v3843_v21  ;;  %v3845_v51 = vld [vmem:[#allocation61_spill] sm:$0xff] }
  0xcc   : > { %2200 = vtanh.f32 %v1249_v6  ;;  %v1271_v29 = vadd.f32 %v1267_v24, %v1261_v1  ;;  %v1272_v41 = vadd.f32 %v1268_v60, %v1262_v52  ;;  %v1287_v17 = vrot.slane %v1283_v49, 5 }
  0xcd   : > { %2202 = vtanh.f32 %v1250_v11  ;;  %v1288_v57 = vrot.slane %v1284_v63, 5  ;;  %v1293_v33 = vmul.f32 %v3032_v3, %v3844_v34  ;;  %v1294_v38 = vmul.f32 %v3036_v54, %v3844_v34 }
  0xce   : > { %v1281_v31 = vadd.f32 %v1277_v32, %v1271_v29  ;;  %v1282_v14 = vadd.f32 %v1278_v5, %v1272_v41  ;;  %v1303_v18 = vmul.f32 %v3038_v25, %v3845_v51  ;;  %v1304_v50 = vmul.f32 %v3040_v45, %v3845_v51 }
  0xcf   : > { %v1297_v16 = vrot.slane %v1293_v33, 6  ;;  %v1298_v24 = vrot.slane %v1294_v38, 6  ;;  %v1313_v60 = vmul.f32 %v3064_v10, %v2980_v35  ;;  %v1314_v6 = vmul.f32 %v3070_v13, %v2980_v35 }
  0xd0   : > { %v1291_v1 = vadd.f32 %v1287_v17, %v1281_v31  ;;  %v1292_v52 = vadd.f32 %v1288_v57, %v1282_v14  ;;  %v1307_v49 = vrot.slane %v1303_v18, 7  ;;  %v1308_v11 = vrot.slane %v1304_v50, 7 }
  0xd1   : > { %v1319_v41 = vmul.f32 %v3006_v12, %v2982_v42  ;;  %v1320_v32 = vmul.f32 %v3008_v44, %v2982_v42  ;;  %v1321_v5 = vmul.f32 %v3116_v26, %v2992_v36  ;;  %v1322_v63 = vmul.f32 %v3120_v62, %v2992_v36 }
  0xd2   : > { %v2201_v29 = vpop.eup %2200  ;;  %v1301_v33 = vadd.f32 %v1297_v16, %v1291_v1  ;;  %v1302_v38 = vadd.f32 %v1298_v24, %v1292_v52  ;;  %v1325_v57 = vmul.f32 %v3010_v2, %v2982_v42  ;;  %v1326_v14 = vmul.f32 %v3012_v53, %v2982_v42 }
  0xd3   : > { %v2203_v17 = vpop.eup %2202  ;;  %v3288_v12 = vadd.f32 %v1321_v5, %v1319_v41  ;;  %v3290_v31 = vadd.f32 %v1322_v63, %v1320_v32  ;;  %v1327_v44 = vmul.f32 %v3144_v40, %v2992_v36  ;;  %v1328_v26 = vmul.f32 %v3150_v58, %v2992_v36 }
  0xd4   : > { %v1311_v62 = vadd.f32 %v1307_v49, %v1301_v33  ;;  %v1312_v18 = vadd.f32 %v1308_v11, %v1302_v38  ;;  %v1331_v50 = vmul.f32 %v3014_v9, %v2982_v42  ;;  %v1332_v2 = vmul.f32 %v3016_v23, %v2982_v42  ;;  %v3846_v33 = vld [vmem:[#allocation12_spill] sm:$0xff] }
  0xd5   : > { %v3300_v53 = vadd.f32 %v1327_v44, %v1325_v57  ;;  %v3302_v16 = vadd.f32 %v1328_v26, %v1326_v14  ;;  %v1333_v24 = vmul.f32 %v3184_v19, %v2992_v36  ;;  %v1334_v40 = vmul.f32 %v3188_v22, %v2992_v36  ;;  %v3849_v26 = vld [vmem:[#allocation11_spill] sm:$0xff] }
  0xd6   : > { %v1315_v1 = vadd.f32 %v1313_v60, %v1311_v62  ;;  %v1316_v58 = vadd.f32 %v1314_v6, %v1312_v18  ;;  %v1337_v52 = vmul.f32 %v3028_v8, %v2982_v42  ;;  %v1338_v9 = vmul.f32 %v3030_v43, %v2982_v42  ;;  %v3850_v18 = vld [vmem:[#allocation14_spill] sm:$0xff] }
  0xd7   : > { %v3312_v49 = vadd.f32 %v1333_v24, %v1331_v50  ;;  %v3314_v23 = vadd.f32 %v1334_v40, %v1332_v2  ;;  %v1339_v11 = vmul.f32 %v3216_v47, %v2992_v36  ;;  %v1340_v19 = vmul.f32 %v3223_v0, %v2992_v36 }
  0xd8   : > { %2204 = vtanh.f32 %v1315_v1  ;;  %v1343_v22 = vmul.f32 %v3032_v3, %v2982_v42  ;;  %v1344_v8 = vmul.f32 %v3036_v54, %v2982_v42  ;;  %v1345_v43 = vmul.f32 %v3250_v46, %v2992_v36 }
  0xd9   : > { %2206 = vtanh.f32 %v1316_v58  ;;  %v3326_v60 = vadd.f32 %v1339_v11, %v1337_v52  ;;  %v3328_v6 = vadd.f32 %v1340_v19, %v1338_v9  ;;  %v1346_v47 = vmul.f32 %v3256_v55, %v2992_v36 }
  0xda   : > { %v3332_v41 = vadd.f32 %v1345_v43, %v1343_v22  ;;  %v1349_v0 = vmul.f32 %v3038_v25, %v2982_v42  ;;  %v1350_v3 = vmul.f32 %v3040_v45, %v2982_v42  ;;  %v1351_v54 = vmul.f32 %v2201_v29, %v2992_v36 }
  0xdb   : > { %v3339_v32 = vadd.f32 %v1346_v47, %v1344_v8  ;;  %v1352_v46 = vmul.f32 %v2203_v17, %v2992_v36  ;;  %v1355_v5 = vmul.f32 %v3064_v10, %v2982_v42  ;;  %v1356_v55 = vmul.f32 %v3070_v13, %v2982_v42  ;;  %v3847_v10 = vld [vmem:[#allocation13_spill] sm:$0xff]  ;;  %v3848_v17 = vld [vmem:[#allocation10_spill] sm:$0xff] }
  0xdc   : > { %v3346_v63 = vadd.f32 %v1351_v54, %v1349_v0  ;;  %v1361_v25 = vmul.f32 %v3288_v12, %v2474_v7  ;;  %v1362_v45 = vmul.f32 %v3290_v31, %v2474_v7  ;;  %v1365_v29 = vmul.f32 %v3300_v53, %v3846_v33 }
  0xdd   : > { %v3354_v38 = vadd.f32 %v1352_v46, %v1350_v3  ;;  %v1366_v57 = vmul.f32 %v3302_v16, %v3846_v33  ;;  %v1375_v14 = vmul.f32 %v3312_v49, %v3847_v10  ;;  %v1376_v42 = vmul.f32 %v3314_v23, %v3847_v10 }
  0xde   : > { %v2205_v13 = vpop.eup %2204  ;;  %v1363_v44 = vadd.f32 %v1361_v25, %v3848_v17  ;;  %v1364_v62 = vadd.f32 %v1362_v45, %v3849_v26  ;;  %v1369_v7 = vrot.slane %v1365_v29, 1  ;;  %v1385_v50 = vmul.f32 %v3326_v60, %v3850_v18 }
  0xdf   : > { %v2207_v2 = vpop.eup %2206  ;;  %v1357_v24 = vmul.f32 %v2205_v13, %v2992_v36  ;;  %v1370_v40 = vrot.slane %v1366_v57, 1  ;;  %v1379_v1 = vrot.slane %v1375_v14, 2  ;;  %v1380_v58 = vrot.slane %v1376_v42, 2  ;;  %v3851_v14 = vld [vmem:[#allocation16_spill] sm:$0xff] }
  0xe0   : > { %v1358_v52 = vmul.f32 %v2207_v2, %v2992_v36  ;;  %v1373_v9 = vadd.f32 %v1369_v7, %v1363_v44  ;;  %v1386_v11 = vmul.f32 %v3328_v6, %v3850_v18  ;;  %v1389_v19 = vrot.slane %v1385_v50, 3 }
  0xe1   : > { %v3370_v22 = vadd.f32 %v1357_v24, %v1355_v5  ;;  %v1374_v8 = vadd.f32 %v1370_v40, %v1364_v62  ;;  %v1395_v43 = vmul.f32 %v3332_v41, %v2506_v27  ;;  %v1396_v47 = vmul.f32 %v3339_v32, %v2506_v27  ;;  %v3853_v24 = vld [vmem:[#allocation18_spill] sm:$0xff] }
  0xe2   : > { %v3376_v0 = vadd.f32 %v1358_v52, %v1356_v55  ;;  %v1383_v3 = vadd.f32 %v1379_v1, %v1373_v9  ;;  %v1390_v54 = vrot.slane %v1386_v11, 3  ;;  %v1405_v36 = vmul.f32 %v3346_v63, %v2508_v28  ;;  %v3854_v9 = vld [vmem:[#allocation15_spill] sm:$0xff] }
  0xe3   : > { %v1384_v46 = vadd.f32 %v1380_v58, %v1374_v8  ;;  %v1399_v25 = vrot.slane %v1395_v43, 4  ;;  %v1400_v45 = vrot.slane %v1396_v47, 4  ;;  %v1406_v5 = vmul.f32 %v3354_v38, %v2508_v28  ;;  %v3852_v28 = vld [vmem:[#allocation17_spill] sm:$0xff] }
  0xe4   : > { %v1393_v33 = vadd.f32 %v1389_v19, %v1383_v3  ;;  %v1409_v29 = vrot.slane %v1405_v36, 5  ;;  %v1415_v57 = vmul.f32 %v3370_v22, %v2522_v39  ;;  %v1416_v27 = vmul.f32 %v3376_v0, %v2522_v39 }
  0xe5   : > { %v1394_v55 = vadd.f32 %v1390_v54, %v1384_v46  ;;  %v1410_v10 = vrot.slane %v1406_v5, 5  ;;  %v1427_v42 = vmul.f32 %v3288_v12, %v3851_v14  ;;  %v1428_v13 = vmul.f32 %v3290_v31, %v3851_v14 }
  0xe6   : > { %v1403_v17 = vadd.f32 %v1399_v25, %v1393_v33  ;;  %v1419_v44 = vrot.slane %v1415_v57, 6  ;;  %v1420_v26 = vrot.slane %v1416_v27, 6  ;;  %v1437_v62 = vmul.f32 %v3300_v53, %v3852_v28 }
  0xe7   : > { %v1404_v7 = vadd.f32 %v1400_v45, %v1394_v55  ;;  %v1431_v18 = vrot.slane %v1427_v42, 7  ;;  %v1432_v50 = vrot.slane %v1428_v13, 7  ;;  %v1438_v39 = vmul.f32 %v3302_v16, %v3852_v28 }
  0xe8   : > { %v1413_v2 = vadd.f32 %v1409_v29, %v1403_v17  ;;  %v1441_v40 = vmul.f32 %v3312_v49, %v3853_v24  ;;  %v1442_v1 = vmul.f32 %v3314_v23, %v3853_v24  ;;  %v1451_v58 = vmul.f32 %v3326_v60, %v2561_v4 }
  0xe9   : > { %v1414_v52 = vadd.f32 %v1410_v10, %v1404_v7  ;;  %v1435_v11 = vadd.f32 %v1431_v18, %v3854_v9  ;;  %v1436_v19 = vadd.f32 %v1432_v50, %v2535_v48  ;;  %v1452_v8 = vmul.f32 %v3328_v6, %v2561_v4 }
  0xea   : > { %v1445_v43 = vrot.slane %v1441_v40, 1  ;;  %v1446_v47 = vrot.slane %v1442_v1, 1  ;;  %v1455_v36 = vrot.slane %v1451_v58, 2  ;;  %v1423_v25 = vadd.f32 %v1419_v44, %v1413_v2 }
  0xeb   : > { %v1439_v3 = vadd.f32 %v1437_v62, %v1435_v11  ;;  %v1440_v54 = vadd.f32 %v1438_v39, %v1436_v19  ;;  %v1456_v46 = vrot.slane %v1452_v8, 2  ;;  %v1461_v45 = vmul.f32 %v3332_v41, %v2578_v20  ;;  %v3857_v11 = vld [vmem:[#allocation19_spill] sm:$0xff]  ;;  %v3858_v8 = vld [vmem:[#allocation20_spill] sm:$0xff] }
  0xec   : > { %v1462_v5 = vmul.f32 %v3339_v32, %v2578_v20  ;;  %v1471_v33 = vmul.f32 %v3346_v63, %v2587_v30  ;;  %v1424_v48 = vadd.f32 %v1420_v26, %v1414_v52  ;;  %v1472_v4 = vmul.f32 %v3354_v38, %v2587_v30  ;;  %v3855_v30 = vld [vmem:[#allocation21_spill] sm:$0xff] }
  0xed   : > { %v1449_v29 = vadd.f32 %v1445_v43, %v1439_v3  ;;  %v1450_v57 = vadd.f32 %v1446_v47, %v1440_v54  ;;  %v1465_v27 = vrot.slane %v1461_v45, 3  ;;  %v1481_v14 = vmul.f32 %v3370_v22, %v2596_v37  ;;  %v3859_v47 = vld [vmem:[#allocation23_spill] sm:$0xff] }
  0xee   : > { %v1466_v55 = vrot.slane %v1462_v5, 3  ;;  %v1475_v10 = vrot.slane %v1471_v33, 4  ;;  %v1476_v17 = vrot.slane %v1472_v4, 4  ;;  %v1482_v20 = vmul.f32 %v3376_v0, %v2596_v37  ;;  %v3856_v37 = vld [vmem:[#allocation22_spill] sm:$0xff] }
  0xef   : > { %v1459_v42 = vadd.f32 %v1455_v36, %v1449_v29  ;;  %v1460_v13 = vadd.f32 %v1456_v46, %v1450_v57  ;;  %v1485_v44 = vrot.slane %v1481_v14, 5  ;;  %v1493_v26 = vmul.f32 %v3288_v12, %v2616_v56  ;;  %v3860_v46 = vld [vmem:[#allocation24_spill] sm:$0xff] }
  0xf0   : > { %v1494_v28 = vmul.f32 %v3290_v31, %v2616_v56  ;;  %v1503_v62 = vmul.f32 %v3300_v53, %v3855_v30  ;;  %v1486_v50 = vrot.slane %v1482_v20, 5  ;;  %v1504_v39 = vmul.f32 %v3302_v16, %v3855_v30 }
  0xf1   : > { %v1469_v7 = vadd.f32 %v1465_v27, %v1459_v42  ;;  %v1470_v18 = vadd.f32 %v1466_v55, %v1460_v13  ;;  %v1497_v2 = vrot.slane %v1493_v26, 6  ;;  %v1513_v1 = vmul.f32 %v3312_v49, %v3856_v37 }
  0xf2   : > { %v1498_v24 = vrot.slane %v1494_v28, 6  ;;  %v1507_v40 = vrot.slane %v1503_v62, 7  ;;  %v1508_v9 = vrot.slane %v1504_v39, 7  ;;  %v1514_v56 = vmul.f32 %v3314_v23, %v3856_v37  ;;  %v3863_v28 = vld [vmem:[#allocation29_spill] sm:$0xff] }
  0xf3   : > { %v1479_v58 = vadd.f32 %v1475_v10, %v1469_v7  ;;  %v1480_v52 = vadd.f32 %v1476_v17, %v1470_v18  ;;  %v1501_v19 = vadd.f32 %v1497_v2, %v3857_v11  ;;  %v1517_v3 = vmul.f32 %v3326_v60, %v3859_v47  ;;  %v3861_v10 = vld [vmem:[#allocation25_spill] sm:$0xff]  ;;  %v3865_v11 = vld [vmem:[#allocation27_spill] sm:$0xff] }
  0xf4   : > { %v1502_v43 = vadd.f32 %v1498_v24, %v3858_v8  ;;  %v1518_v54 = vmul.f32 %v3328_v6, %v3859_v47  ;;  %2208 = vtanh.f32 %v1423_v25  ;;  %v1527_v45 = vmul.f32 %v3332_v41, %v3860_v46 }
  0xf5   : > { %v1489_v36 = vadd.f32 %v1485_v44, %v1479_v58  ;;  %v1528_v5 = vmul.f32 %v3339_v32, %v3860_v46  ;;  %v1511_v33 = vadd.f32 %v1507_v40, %v1501_v19  ;;  %v1521_v57 = vrot.slane %v1517_v3, 1  ;;  %v3862_v44 = vld [vmem:[#allocation26_spill] sm:$0xff]  ;;  %v3867_v46 = vld [vmem:[#allocation28_spill] sm:$0xff] }
  0xf6   : > { %v1512_v29 = vadd.f32 %v1508_v9, %v1502_v43  ;;  %v1522_v4 = vrot.slane %v1518_v54, 1  ;;  %2210 = vtanh.f32 %v1424_v48  ;;  %v1490_v27 = vadd.f32 %v1486_v50, %v1480_v52  ;;  %v3864_v40 = vld [vmem:[#allocation30_spill] sm:$0xff]  ;;  %v3866_v43 = vld [vmem:[#allocation31_spill] sm:$0xff] }
  0xf7   : > { %v1531_v55 = vrot.slane %v1527_v45, 2  ;;  %v1537_v14 = vmul.f32 %v3346_v63, %v3861_v10  ;;  %v1515_v42 = vadd.f32 %v1513_v1, %v1511_v33  ;;  %v1532_v25 = vrot.slane %v1528_v5, 2 }
  0xf8   : > { %v1516_v13 = vadd.f32 %v1514_v56, %v1512_v29  ;;  %v1538_v17 = vmul.f32 %v3354_v38, %v3861_v10  ;;  %2212 = vtanh.f32 %v1489_v36  ;;  %v1547_v26 = vmul.f32 %v3370_v22, %v3862_v44 }
  0xf9   : > { %v1541_v20 = vrot.slane %v1537_v14, 3  ;;  %v1559_v30 = vmul.f32 %v3288_v12, %v3863_v28  ;;  %v1525_v48 = vadd.f32 %v1521_v57, %v1515_v42  ;;  %v1548_v7 = vmul.f32 %v3376_v0, %v3862_v44 }
  0xfa   : > { %v1526_v62 = vadd.f32 %v1522_v4, %v1516_v13  ;;  %v1560_v18 = vmul.f32 %v3290_v31, %v3863_v28  ;;  %v3450_v50 = vpop.eup %2208  ;;  %v1542_v39 = vrot.slane %v1538_v17, 3  ;;  %v1551_v2 = vrot.slane %v1547_v26, 4  ;;  %v3870_v28 = vld [vmem:[#allocation34_spill] sm:$0xff] }
  0xfb   : > { %v1563_v24 = vrot.slane %v1559_v30, 5  ;;  %v1569_v37 = vmul.f32 %v3300_v53, %v3864_v40  ;;  %v1535_v1 = vadd.f32 %v1531_v55, %v1525_v48  ;;  %v1570_v9 = vmul.f32 %v3302_v16, %v3864_v40  ;;  %v3868_v55 = vld [vmem:[#allocation32_spill] sm:$0xff] }
  0xfc   : > { %v1536_v58 = vadd.f32 %v1532_v25, %v1526_v62  ;;  %v1564_v52 = vrot.slane %v1560_v18, 5  ;;  %v3456_v56 = vpop.eup %2210  ;;  %v1579_v47 = vmul.f32 %v3312_v49, %v3866_v43  ;;  %v1580_v3 = vmul.f32 %v3314_v23, %v3866_v43  ;;  %v3873_v43 = vld [vmem:[#allocation39_spill] sm:$0xff] }
  0xfd   : > { %v1567_v19 = vadd.f32 %v1563_v24, %v3865_v11  ;;  %v1573_v8 = vrot.slane %v1569_v37, 6  ;;  %v1545_v54 = vadd.f32 %v1541_v20, %v1535_v1  ;;  %v1552_v36 = vrot.slane %v1548_v7, 4  ;;  %v3869_v20 = vld [vmem:[#allocation33_spill] sm:$0xff] }
  0xfe   : > { %v1568_v45 = vadd.f32 %v1564_v52, %v3867_v46  ;;  %v1574_v5 = vrot.slane %v1570_v9, 6  ;;  %v3464_v33 = vpop.eup %2212  ;;  %v1583_v57 = vrot.slane %v1579_v47, 7  ;;  %v1584_v4 = vrot.slane %v1580_v3, 7  ;;  %v3872_v9 = vld [vmem:[#allocation36_spill] sm:$0xff] }
  0xff   : > { %v1577_v29 = vadd.f32 %v1573_v8, %v1567_v19  ;;  %v1589_v10 = vmul.f32 %v3326_v60, %v3868_v55  ;;  %v1546_v14 = vadd.f32 %v1542_v39, %v1536_v58  ;;  %v1555_v42 = vadd.f32 %v1551_v2, %v1545_v54  ;;  %v3871_v2 = vld [vmem:[#allocation35_spill] sm:$0xff] }
 0x100   : > { %v1578_v13 = vadd.f32 %v1574_v5, %v1568_v45  ;;  %v1590_v25 = vmul.f32 %v3328_v6, %v3868_v55  ;;  %v1593_v44 = vmul.f32 %v3332_v41, %v3869_v20  ;;  %v1594_v26 = vmul.f32 %v3339_v32, %v3869_v20  ;;  %v3874_v45 = vld [vmem:[#allocation40_spill] sm:$0xff] }
 0x101   : > { %v1587_v17 = vadd.f32 %v1583_v57, %v1577_v29  ;;  %v1603_v30 = vmul.f32 %v3346_v63, %v3870_v28  ;;  %2214 = vtanh.f32 %v1490_v27  ;;  %v1604_v62 = vmul.f32 %v3354_v38, %v3870_v28 }
 0x102   : > { %v1588_v48 = vadd.f32 %v1584_v4, %v1578_v13  ;;  %v1597_v18 = vrot.slane %v1593_v44, 1  ;;  %v1598_v39 = vrot.slane %v1594_v26, 1  ;;  %v1613_v24 = vmul.f32 %v3370_v22, %v3871_v2 }
 0x103   : > { %v1591_v7 = vadd.f32 %v1589_v10, %v1587_v17  ;;  %v1556_v40 = vadd.f32 %v1552_v36, %v1546_v14  ;;  %2216 = vtanh.f32 %v1555_v42  ;;  %v1614_v1 = vmul.f32 %v3376_v0, %v3871_v2  ;;  %v3875_v42 = vld [vmem:[#allocation37_spill] sm:$0xff] }
 0x104   : > { %v1592_v37 = vadd.f32 %v1590_v25, %v1588_v48  ;;  %v1607_v52 = vrot.slane %v1603_v30, 2  ;;  %v1625_v27 = vmul.f32 %v3288_v12, %v3872_v9  ;;  %v1626_v11 = vmul.f32 %v3290_v31, %v3872_v9  ;;  %v3876_v25 = vld [vmem:[#allocation38_spill] sm:$0xff]  ;;  %v3877_v30 = vld [vmem:[#allocation41_spill] sm:$0xff]  ;;  %v3879_v9 = vld [vmem:[#allocation43_spill] sm:$0xff] }
 0x105   : > { %v1601_v58 = vadd.f32 %v1597_v18, %v1591_v7  ;;  %v1608_v8 = vrot.slane %v1604_v62, 2  ;;  %v1635_v47 = vmul.f32 %v3300_v53, %v3873_v43  ;;  %v1636_v3 = vmul.f32 %v3302_v16, %v3873_v43 }
 0x106   : > { %v1602_v19 = vadd.f32 %v1598_v39, %v1592_v37  ;;  %v1617_v54 = vrot.slane %v1613_v24, 3  ;;  %v1629_v36 = vrot.slane %v1625_v27, 4  ;;  %v1630_v46 = vrot.slane %v1626_v11, 4  ;;  %v3878_v24 = vld [vmem:[#allocation42_spill] sm:$0xff] }
 0x107   : > { %v1645_v5 = vmul.f32 %v3312_v49, %v3874_v45  ;;  %v3492_v29 = vpop.eup %2214  ;;  %v1618_v57 = vrot.slane %v1614_v1, 3  ;;  %v1639_v4 = vrot.slane %v1635_v47, 5  ;;  %v1640_v55 = vrot.slane %v1636_v3, 5 }
 0x108   : > { %v1646_v10 = vmul.f32 %v3314_v23, %v3874_v45  ;;  %v1611_v14 = vadd.f32 %v1607_v52, %v1601_v58  ;;  %v1633_v13 = vadd.f32 %v1629_v36, %v3875_v42  ;;  %v1634_v17 = vadd.f32 %v1630_v46, %v3876_v25  ;;  %v3881_v46 = vld [vmem:[#allocation44_spill] sm:$0xff] }
 0x109   : > { %v1649_v20 = vrot.slane %v1645_v5, 6  ;;  %v3498_v44 = vpop.eup %2216  ;;  %v1612_v26 = vadd.f32 %v1608_v8, %v1602_v19  ;;  %v1655_v48 = vmul.f32 %v3326_v60, %v3877_v30  ;;  %v1656_v62 = vmul.f32 %v3328_v6, %v3877_v30  ;;  %v3880_v8 = vld [vmem:[#allocation47_spill] sm:$0xff]  ;;  %v3884_v30 = vld [vmem:[#allocation49_spill] sm:$0xff] }
 0x10a   : > { %v1650_v28 = vrot.slane %v1646_v10, 6  ;;  %2218 = vtanh.f32 %v1556_v40  ;;  %v1643_v7 = vadd.f32 %v1639_v4, %v1633_v13  ;;  %v1644_v18 = vadd.f32 %v1640_v55, %v1634_v17  ;;  %v3882_v13 = vld [vmem:[#allocation48_spill] sm:$0xff] }
 0x10b   : > { %v1659_v39 = vrot.slane %v1655_v48, 7  ;;  %v1660_v2 = vrot.slane %v1656_v62, 7  ;;  %v1665_v37 = vmul.f32 %v3332_v41, %v3878_v24  ;;  %v1666_v1 = vmul.f32 %v3339_v32, %v3878_v24 }
 0x10c   : > { %v1653_v58 = vadd.f32 %v1649_v20, %v1643_v7  ;;  %v1654_v52 = vadd.f32 %v1650_v28, %v1644_v18  ;;  %v1669_v27 = vmul.f32 %v3346_v63, %v3879_v9  ;;  %v1670_v11 = vmul.f32 %v3354_v38, %v3879_v9  ;;  %v3883_v20 = vld [vmem:[#allocation45_spill] sm:$0xff] }
 0x10d   : > { %v1621_v19 = vadd.f32 %v1617_v54, %v1611_v14  ;;  %v1622_v40 = vadd.f32 %v1618_v57, %v1612_v26  ;;  %v1691_v43 = vmul.f32 %v3288_v12, %v3880_v8  ;;  %v1692_v47 = vmul.f32 %v3290_v31, %v3880_v8  ;;  %v3885_v8 = vld [vmem:[#allocation51_spill] sm:$0xff] }
 0x10e   : > { %v1663_v3 = vadd.f32 %v1659_v39, %v1653_v58  ;;  %v1664_v36 = vadd.f32 %v1660_v2, %v1654_v52  ;;  %v1679_v45 = vmul.f32 %v3370_v22, %v3881_v46  ;;  %v1680_v5 = vmul.f32 %v3376_v0, %v3881_v46 }
 0x10f   : > { %v1673_v4 = vrot.slane %v1669_v27, 1  ;;  %v1674_v55 = vrot.slane %v1670_v11, 1  ;;  %v1695_v10 = vrot.slane %v1691_v43, 3  ;;  %v1696_v42 = vrot.slane %v1692_v47, 3 }
 0x110   : > { %v3520_v54 = vpop.eup %2218  ;;  %v1667_v57 = vadd.f32 %v1665_v37, %v1663_v3  ;;  %v1668_v14 = vadd.f32 %v1666_v1, %v1664_v36  ;;  %v1701_v25 = vmul.f32 %v3300_v53, %v3882_v13  ;;  %v1702_v17 = vmul.f32 %v3302_v16, %v3882_v13 }
 0x111   : > { %v1699_v26 = vadd.f32 %v1695_v10, %v3883_v20  ;;  %v1700_v28 = vadd.f32 %v1696_v42, %v3833_v59  ;;  %v1711_v48 = vmul.f32 %v3312_v49, %v3884_v30  ;;  %v1712_v62 = vmul.f32 %v3314_v23, %v3884_v30 }
 0x112   : > { %v1683_v7 = vrot.slane %v1679_v45, 2  ;;  %v1684_v18 = vrot.slane %v1680_v5, 2  ;;  %v1705_v39 = vrot.slane %v1701_v25, 4  ;;  %v1706_v2 = vrot.slane %v1702_v17, 4 }
 0x113   : > { %v1715_v24 = vrot.slane %v1711_v48, 5  ;;  %v1716_v37 = vrot.slane %v1712_v62, 5  ;;  %v1721_v1 = vmul.f32 %v3326_v60, %v3834_v15  ;;  %v1722_v58 = vmul.f32 %v3328_v6, %v3834_v15  ;;  %v3886_v15 = vld [vmem:[#allocation52_spill] sm:$0xff]  ;;  %v3889_v62 = vld [vmem:[#allocation53_spill] sm:$0xff] }
 0x114   : > { %v1677_v52 = vadd.f32 %v1673_v4, %v1667_v57  ;;  %v1678_v59 = vadd.f32 %v1674_v55, %v1668_v14  ;;  %v1709_v9 = vadd.f32 %v1705_v39, %v1699_v26  ;;  %v1710_v27 = vadd.f32 %v1706_v2, %v1700_v28  ;;  %v3887_v55 = vld [vmem:[#allocation54_spill] sm:$0xff]  ;;  %v3888_v57 = vld [vmem:[#allocation57_spill] sm:$0xff] }
 0x115   : > { %2220 = vtanh.f32 %v1621_v19  ;;  %v1725_v11 = vrot.slane %v1721_v1, 6  ;;  %v1731_v43 = vmul.f32 %v3332_v41, %v3885_v8  ;;  %v1726_v36 = vrot.slane %v1722_v58, 6 }
 0x116   : > { %v1719_v47 = vadd.f32 %v1715_v24, %v1709_v9  ;;  %v1720_v3 = vadd.f32 %v1716_v37, %v1710_v27  ;;  %v1732_v46 = vmul.f32 %v3339_v32, %v3885_v8  ;;  %2222 = vtanh.f32 %v1622_v40  ;;  %v3891_v24 = vld [vmem:[#allocation56_spill] sm:$0xff] }
 0x117   : > { %v1687_v45 = vadd.f32 %v1683_v7, %v1677_v52  ;;  %v1688_v5 = vadd.f32 %v1684_v18, %v1678_v59  ;;  %v1735_v10 = vrot.slane %v1731_v43, 7  ;;  %v1741_v4 = vmul.f32 %v3346_v63, %v3886_v15  ;;  %v3890_v7 = vld [vmem:[#allocation58_spill] sm:$0xff] }
 0x118   : > { %v1757_v19 = vmul.f32 %v3288_v12, %v3887_v55  ;;  %v1758_v42 = vmul.f32 %v3290_v31, %v3887_v55  ;;  %v1767_v14 = vmul.f32 %v3300_v53, %v3888_v57  ;;  %v1768_v13 = vmul.f32 %v3302_v16, %v3888_v57 }
 0x119   : > { %v1729_v25 = vadd.f32 %v1725_v11, %v1719_v47  ;;  %v1730_v40 = vadd.f32 %v1726_v36, %v1720_v3  ;;  %v1736_v17 = vrot.slane %v1732_v46, 7  ;;  %v1742_v20 = vmul.f32 %v3354_v38, %v3886_v15 }
 0x11a   : > { %v1761_v28 = vrot.slane %v1757_v19, 2  ;;  %v1762_v30 = vrot.slane %v1758_v42, 2  ;;  %v1771_v12 = vrot.slane %v1767_v14, 3  ;;  %v1772_v48 = vrot.slane %v1768_v13, 3 }
 0x11b   : > { %v3552_v26 = vpop.eup %2220  ;;  %v1745_v31 = vmul.f32 %v3370_v22, %v3889_v62  ;;  %v1746_v53 = vmul.f32 %v3376_v0, %v3889_v62  ;;  %v1777_v16 = vmul.f32 %v3312_v49, %v3890_v7  ;;  %v1778_v18 = vmul.f32 %v3314_v23, %v3890_v7 }
 0x11c   : > { %v3562_v39 = vpop.eup %2222  ;;  %v1765_v2 = vadd.f32 %v1761_v28, %v3841_v61  ;;  %v1766_v37 = vadd.f32 %v1762_v30, %v3891_v24  ;;  %v1787_v1 = vmul.f32 %v3326_v60, %v3843_v21  ;;  %v1788_v58 = vmul.f32 %v3328_v6, %v3843_v21 }
 0x11d   : > { %v1739_v52 = vadd.f32 %v1735_v10, %v1729_v25  ;;  %v1740_v59 = vadd.f32 %v1736_v17, %v1730_v40  ;;  %v1781_v9 = vrot.slane %v1777_v16, 4  ;;  %v1782_v27 = vrot.slane %v1778_v18, 4 }
 0x11e   : > { %v1775_v49 = vadd.f32 %v1771_v12, %v1765_v2  ;;  %v1776_v11 = vadd.f32 %v1772_v48, %v1766_v37  ;;  %v1791_v8 = vrot.slane %v1787_v1, 5  ;;  %v1792_v23 = vrot.slane %v1788_v58, 5 }
 0x11f   : > { %2224 = vtanh.f32 %v1687_v45  ;;  %v1797_v61 = vmul.f32 %v3332_v41, %v3844_v34  ;;  %v1798_v43 = vmul.f32 %v3339_v32, %v3844_v34  ;;  %v1807_v60 = vmul.f32 %v3346_v63, %v3845_v51 }
 0x120   : > { %v1749_v47 = vrot.slane %v1745_v31, 1  ;;  %v1785_v21 = vadd.f32 %v1781_v9, %v1775_v49  ;;  %v1786_v6 = vadd.f32 %v1782_v27, %v1776_v11  ;;  %v1808_v3 = vmul.f32 %v3354_v38, %v3845_v51 }
 0x121   : > { %v1743_v36 = vadd.f32 %v1741_v4, %v1739_v52  ;;  %v1750_v46 = vrot.slane %v1746_v53, 1  ;;  %v1801_v10 = vrot.slane %v1797_v61, 6  ;;  %v1802_v15 = vrot.slane %v1798_v43, 6 }
 0x122   : > { %v1744_v45 = vadd.f32 %v1742_v20, %v1740_v59  ;;  %v1795_v55 = vadd.f32 %v1791_v8, %v1785_v21  ;;  %v1796_v19 = vadd.f32 %v1792_v23, %v1786_v6  ;;  %v1811_v41 = vrot.slane %v1807_v60, 7 }
 0x123   : > { %2226 = vtanh.f32 %v1688_v5  ;;  %v1825_v34 = vrot.slane %v3450_v50, 7  ;;  %v1826_v32 = vrot.slane %v3456_v56, 7  ;;  %v1812_v57 = vrot.slane %v1808_v3, 7 }
 0x124   : > { %v1805_v63 = vadd.f32 %v1801_v10, %v1795_v55  ;;  %v1806_v42 = vadd.f32 %v1802_v15, %v1796_v19  ;;  %v1753_v13 = vadd.f32 %v1749_v47, %v1743_v36  ;;  %v1817_v51 = vmul.f32 %v3370_v22, %v2980_v35 }
 0x125   : > { %v2225_v14 = vpop.eup %2224  ;;  %vm1829_vm0 = vcmp.gt.f32.partialorder %v3464_v33, %v1825_v34  ;;  %vm1830_vm1 = vcmp.gt.f32.partialorder %v3492_v29, %v1826_v32  ;;  %v1754_v38 = vadd.f32 %v1750_v46, %v1744_v45  ;;  %v2357_v25 = vmov 0  }
 0x126   : > { %v1815_v4 = vadd.f32 %v1811_v41, %v1805_v63  ;;  %v1831_v5 = vsel %vm1829_vm0, %v3464_v33, %v1825_v34  ;;  %v1832_v50 = vsel %vm1830_vm1, %v3492_v29, %v1826_v32  ;;  %v1833_v56 = vsel %vm1829_vm0, 1, %v2357_v25 }
 0x127   : > { %v1834_v40 = vsel %vm1830_vm1, 1, %v2357_v25  ;;  %v1837_v17 = vrot.slane %v1831_v5, 7  ;;  %v1838_v20 = vrot.slane %v1832_v50, 7  ;;  %v1816_v28 = vadd.f32 %v1812_v57, %v1806_v42 }
 0x128   : > { %v1818_v30 = vmul.f32 %v3376_v0, %v2980_v35  ;;  %v1845_v22 = vrot.slane %v1833_v56, 7  ;;  %v1846_v12 = vrot.slane %v1834_v40, 7  ;;  %v1819_v62 = vadd.f32 %v1817_v51, %v1815_v4 }
 0x129   : > { %v2227_v48 = vpop.eup %2226  ;;  %vm1841_vm2 = vcmp.gt.f32.partialorder %v3498_v44, %v1837_v17  ;;  %vm1842_vm3 = vcmp.gt.f32.partialorder %v3520_v54, %v1838_v20  ;;  %2228 = vtanh.f32 %v1753_v13  ;;  %v1907_v19 = vlaneseq }
 0x12a   : > { %v1843_v33 = vsel %vm1841_vm2, %v3498_v44, %v1837_v17  ;;  %v1844_v29 = vsel %vm1842_vm3, %v3520_v54, %v1838_v20  ;;  %v1847_v31 = vsel %vm1841_vm2, 2, %v1845_v22  ;;  %v1848_v53 = vsel %vm1842_vm3, 2, %v1846_v12 }
 0x12b   : > { %v1851_v7 = vrot.slane %v1843_v33, 7  ;;  %v1852_v16 = vrot.slane %v1844_v29, 7  ;;  %2230 = vtanh.f32 %v1754_v38  ;;  %v1820_v18 = vadd.f32 %v1818_v30, %v1816_v28 }
 0x12c   : > { %v1859_v35 = vrot.slane %v1847_v31, 7  ;;  %v1860_v0 = vrot.slane %v1848_v53, 7  ;;  %2232 = vtanh.f32 %v1819_v62  ;;  %vm1909_vm12 = vcmp.lt.s32.totalorder %v1907_v19, 256 }
 0x12d   : > { %vm1855_vm4 = vcmp.gt.f32.partialorder %v3552_v26, %v1851_v7  ;;  %vm1856_vm5 = vcmp.gt.f32.partialorder %v3562_v39, %v1852_v16  ;;  %2234 = vtanh.f32 %v1820_v18 }
 0x12e   : > { %v1857_v2 = vsel %vm1855_vm4, %v3552_v26, %v1851_v7  ;;  %v1858_v44 = vsel %vm1856_vm5, %v3562_v39, %v1852_v16  ;;  %v1861_v24 = vsel %vm1855_vm4, 3, %v1859_v35  ;;  %v1862_v54 = vsel %vm1856_vm5, 3, %v1860_v0 }
 0x12f   : > { %v1865_v37 = vrot.slane %v1857_v2, 7  ;;  %v1866_v1 = vrot.slane %v1858_v44, 7  ;;  %v1873_v58 = vrot.slane %v1861_v24, 7  ;;  %v1874_v52 = vrot.slane %v1862_v54, 7  ;;  %v2229_v59 = vpop.eup %2228 }
 0x131   : > { %vm1869_vm6 = vcmp.gt.f32.partialorder %v2225_v14, %v1865_v37  ;;  %vm1870_vm7 = vcmp.gt.f32.partialorder %v2227_v48, %v1866_v1  ;;  %v2231_v9 = vpop.eup %2230 }
 0x132   : > { %v1871_v27 = vsel %vm1869_vm6, %v2225_v14, %v1865_v37  ;;  %v1872_v49 = vsel %vm1870_vm7, %v2227_v48, %v1866_v1  ;;  %v1875_v11 = vsel %vm1869_vm6, 4, %v1873_v58  ;;  %v1876_v8 = vsel %vm1870_vm7, 4, %v1874_v52  ;;  %v2233_v23 = vpop.eup %2232 }
 0x133   : > { %v1879_v26 = vrot.slane %v1871_v27, 7  ;;  %v1880_v61 = vrot.slane %v1872_v49, 7  ;;  %v1887_v39 = vrot.slane %v1875_v11, 7  ;;  %v1888_v43 = vrot.slane %v1876_v8, 7  ;;  %v2235_v60 = vpop.eup %2234 }
 0x135   : > { %vm1883_vm8 = vcmp.gt.f32.partialorder %v2229_v59, %v1879_v26  ;;  %vm1884_vm9 = vcmp.gt.f32.partialorder %v2231_v9, %v1880_v61 }
 0x136   : > { %v1885_v47 = vsel %vm1883_vm8, %v2229_v59, %v1879_v26  ;;  %v1886_v21 = vsel %vm1884_vm9, %v2231_v9, %v1880_v61  ;;  %v1889_v6 = vsel %vm1883_vm8, 5, %v1887_v39  ;;  %v1890_v3 = vsel %vm1884_vm9, 5, %v1888_v43 }
 0x137   : > { %v1893_v36 = vrot.slane %v1885_v47, 7  ;;  %v1894_v46 = vrot.slane %v1886_v21, 7  ;;  %v1899_v10 = vrot.slane %v1889_v6, 7  ;;  %v1900_v15 = vrot.slane %v1890_v3, 7 }
 0x139   : > { %vm1897_vm10 = vcmp.gt.f32.partialorder %v2233_v23, %v1893_v36  ;;  %vm1898_vm11 = vcmp.gt.f32.partialorder %v2235_v60, %v1894_v46 }
 0x13a   : > { %v1901_v45 = vsel %vm1897_vm10, 6, %v1899_v10  ;;  %v1902_v55 = vsel %vm1898_vm11, 6, %v1900_v15 }
 0x13b   : > { %1903 = vst [vmem:[#allocation1] sm:$0xff] %v1901_v45 }
 0x13c   : > { %1904 = vst [vmem:[#allocation1 + $0x9] sm:$0xff] %v1902_v55 }
 0x143   : > { %v1906_v41 = vld [vmem:[#allocation1 + $0x6] ss:$9 sm:$0xff] }
 0x144   : > { %1911 = vst.msk [vmem:[%s208_s17] sm:$0x3] %vm1909_vm12, %v1906_v41 }
 0x145   : > { %2299 = shalt.err (!%p2296_p5)
}
 0x146   : > { %2093 = dma.vmem_to_hbm [thread:$0]  (%p2437_p4), %s1928_s18, 32, %s1930_s19, %s1913_s20  }
 0x147 PF: > { %p2099_p6 = scmp.ge.s32.totalorder %s2352_s8, 2  ;;  %s1941_s27 = sand.u32 1, %s2332_s0  }
 0x148   : > { %s1942_s28 = scalar_lea.sflag [#allocation7], %s1941_s27 }
 0x149   : > { %p2096_p7 = pnand %p2099_p6, %p2444_p8 }
 0x14b   : > { %p2097_p9 = pneg %p2096_p7 }
 0x14d   : > { %2327 = dma.done.wait (%p2097_p9), %s1942_s28, 32  }
 0x14e   : > { %2329 = vsyncadd (%p2097_p9), %s1942_s28, 4294967264  ;;  %s36_s8 = sadd.s32 1, %s2352_s8   ;;  %s3892_s0 = smov %s2336_s1 }
 0x14f   : > { %p33_p10 = scmp.ge.s32.totalorder %s36_s8, 4   ;;  %s3893_s1 = smov %s2340_s30 }
 0x150   : > { %s3894_s30 = smov %s2450_s15  ;;  %s3895_s6 = smov %s2348_s7 }
 0x151   : > { %s3896_s7 = smov %s3898_s10  ;;  %35 = sbr.rel (!%p33_p10) target bundleno = 13 (0xd), region = 67 }
 0x156   :  { %1948 = vsyncpa [#allocation7], 1 }
 0x157   :  { %1950 = vsyncpa [#allocation7 + $0x1], 1 }

</bundles_post_ra>
